<compile_context>
chip_gen: v5e
topology: v5e:2x2
jax: 0.10.0
libtpu: 0.0.40
codegen_flags: <defaults>
</compile_context>

<pallas_src>
import functools
import math

import jax
import jax.numpy as jnp
from jax.experimental import pallas as pl
from jax.experimental.pallas import tpu as pltpu

_LANE = 128      # lane width (last dim granularity)
_SUBLANE = 8     # f32 sublane granularity (second-to-last dim)


def _round_up(x, m):
    return ((x + m - 1) // m) * m


def _pad_gate_cols(w, h, h_pad):
    """Pad each of the 4 gate column-blocks of width h up to width h_pad."""
    if h_pad == h:
        return w
    rows = w.shape[0]
    w4 = w.reshape(rows, 4, h)
    w4 = jnp.pad(w4, ((0, 0), (0, 0), (0, h_pad - h)))
    return w4.reshape(rows, 4 * h_pad)


def _lstm_layer_kernel(x_ref, wih_ref, whh_ref, b_ref, h0_ref, c0_ref,
                       out_ref, hn_ref, cn_ref,
                       h_scr, c_scr, gx_scr,
                       *, hidden_pad, t_blk, b_pad, seq_len, seq_pad):
    c_idx = pl.program_id(0)

    @pl.when(c_idx == 0)
    def _():
        h_scr[...] = h0_ref[...]
        c_scr[...] = c0_ref[...]

    # ---- Dense, MXU-friendly input projection for the whole time chunk ----
    # (T_BLK*B_pad, D_in) @ (D_in, 4*H_pad) + bias  ->  VMEM scratch.
    gx_scr[...] = (jnp.dot(x_ref[...], wih_ref[...],
                           preferred_element_type=jnp.float32)
                   + b_ref[...])

    whh = whh_ref[...]              # loaded once per chunk (loop invariant)
    hp = hidden_pad

    def step(t, carry):
        h, c = carry
        row = pl.multiple_of(t * b_pad, b_pad)
        # Only the h-dependent small matmul is on the serial path.
        gates = gx_scr[pl.ds(row, b_pad), :] + jnp.dot(
            h, whh, preferred_element_type=jnp.float32)
        # Lane-aligned gate slices (hp is a multiple of 128).
        i = jax.nn.sigmoid(gates[:, 0 * hp:1 * hp])
        f = jax.nn.sigmoid(gates[:, 1 * hp:2 * hp])
        g = jnp.tanh(gates[:, 2 * hp:3 * hp])
        o = jax.nn.sigmoid(gates[:, 3 * hp:4 * hp])
        c_new = f * c + i * g
        h_new = o * jnp.tanh(c_new)
        if seq_pad != seq_len:
            # Mask carry updates for padded timesteps beyond the true length.
            valid = (c_idx * t_blk + t) < seq_len
            h_new = jnp.where(valid, h_new, h)
            c_new = jnp.where(valid, c_new, c)
        out_ref[pl.ds(row, b_pad), :] = h_new   # VMEM write; HBM DMA per chunk
        return h_new, c_new

    h_fin, c_fin = jax.lax.fori_loop(0, t_blk, step,
                                     (h_scr[...], c_scr[...]), unroll=True)
    h_scr[...] = h_fin
    c_scr[...] = c_fin

    @pl.when(c_idx == pl.num_programs(0) - 1)
    def _():
        hn_ref[...] = h_fin
        cn_ref[...] = c_fin


def _lstm_layer_padded(x2d, wih, whh, bias, h0, c0, *, seq_len, t_blk):
    """One LSTM layer over a padded, flattened sequence.

    x2d:  (S_pad * B_pad, D_in)   -- time-major, batch flattened inside time
    wih:  (D_in, 4*H_pad), whh: (H_pad, 4*H_pad), bias: (1, 4*H_pad)
    h0/c0: (B_pad, H_pad)
    Returns (out2d (S_pad*B_pad, H_pad), h_n (B_pad, H_pad), c_n (B_pad, H_pad)).
    """
    m, d_in = x2d.shape
    b_pad, h_pad = h0.shape
    s_pad = m // b_pad
    nc = s_pad // t_blk
    rows = t_blk * b_pad

    kernel = functools.partial(
        _lstm_layer_kernel, hidden_pad=h_pad, t_blk=t_blk, b_pad=b_pad,
        seq_len=seq_len, seq_pad=s_pad)

    out, hn, cn = pl.pallas_call(
        kernel,
        out_shape=(jax.ShapeDtypeStruct((m, h_pad), jnp.float32),
                   jax.ShapeDtypeStruct((b_pad, h_pad), jnp.float32),
                   jax.ShapeDtypeStruct((b_pad, h_pad), jnp.float32)),
        grid_spec=pltpu.PrefetchScalarGridSpec(
            num_scalar_prefetch=0,
            grid=(nc,),
            in_specs=[
                pl.BlockSpec((rows, d_in), lambda c: (c, 0)),        # x chunk
                pl.BlockSpec((d_in, 4 * h_pad), lambda c: (0, 0)),   # W_ih^T
                pl.BlockSpec((h_pad, 4 * h_pad), lambda c: (0, 0)),  # W_hh^T
                pl.BlockSpec((1, 4 * h_pad), lambda c: (0, 0)),      # bias
                pl.BlockSpec((b_pad, h_pad), lambda c: (0, 0)),      # h0
                pl.BlockSpec((b_pad, h_pad), lambda c: (0, 0)),      # c0
            ],
            out_specs=[
                pl.BlockSpec((rows, h_pad), lambda c: (c, 0)),       # out chunk
                pl.BlockSpec((b_pad, h_pad), lambda c: (0, 0)),      # h_n
                pl.BlockSpec((b_pad, h_pad), lambda c: (0, 0)),      # c_n
            ],
            scratch_shapes=[
                pltpu.VMEM((b_pad, h_pad), jnp.float32),             # h state
                pltpu.VMEM((b_pad, h_pad), jnp.float32),             # c state
                pltpu.VMEM((rows, 4 * h_pad), jnp.float32),          # x-proj
            ],
        ),
        compiler_params=pltpu.CompilerParams(
            dimension_semantics=("arbitrary",)),   # time chunks are sequential
    )(x2d, wih, whh, bias, h0, c0)
    return out, hn, cn


def encoder_lstm_forward(x, params, h0, c0, *, t_blk=None):
    """Multi-layer LSTM (Encoder_LSTM.forward). Returns (rnn_output, (h_n, c_n)).

    x: (S, B, D); params[l] = (W_ih^T (D_in,4H), W_hh^T (H,4H), bias (1,4H));
    h0/c0: (num_layers, B, H).
    """
    S, B, D = x.shape
    H = h0.shape[-1]
    Hp = _round_up(H, _LANE)
    Bp = _round_up(B, _SUBLANE)
    if t_blk is None:
        t_blk = min(S, 32)
    nc = pl.cdiv(S, t_blk)
    Sp = nc * t_blk

    # Pad once; keep activations padded through the whole layer stack.
    x_p = jnp.pad(x, ((0, Sp - S), (0, Bp - B), (0, 0)))
    cur = x_p.reshape(Sp * Bp, D)

    h_list, c_list = [], []
    for l, (w_ih_t, w_hh_t, bias) in enumerate(params):
        d_in = w_ih_t.shape[0]
        wih_p = _pad_gate_cols(w_ih_t, H, Hp)
        if l > 0:
            # input of layer l>0 is the (padded) hidden state of layer l-1
            wih_p = jnp.pad(wih_p, ((0, Hp - d_in), (0, 0)))
        whh_p = jnp.pad(_pad_gate_cols(w_hh_t, H, Hp), ((0, Hp - H), (0, 0)))
        bias_p = _pad_gate_cols(bias, H, Hp)
        h0_p = jnp.pad(h0[l], ((0, Bp - B), (0, Hp - H)))
        c0_p = jnp.pad(c0[l], ((0, Bp - B), (0, Hp - H)))

        cur, hn_p, cn_p = _lstm_layer_padded(cur, wih_p, whh_p, bias_p,
                                             h0_p, c0_p,
                                             seq_len=S, t_blk=t_blk)
        h_list.append(hn_p[:B, :H])
        c_list.append(cn_p[:B, :H])

    out = cur.reshape(Sp, Bp, Hp)[:S, :B, :H]
    return out, (jnp.stack(h_list), jnp.stack(c_list))


def _reference_lstm(x, params, h0, c0):
    """Pure-JAX reference (lax.scan) for correctness checking."""
    layer_in = x
    h_out, c_out = [], []
    for l, (w_ih_t, w_hh_t, bias) in enumerate(params):
        H = h0.shape[-1]

        def step(carry, x_t):
            h, c = carry
            gates = x_t @ w_ih_t + h @ w_hh_t + bias
            i = jax.nn.sigmoid(gates[:, 0 * H:1 * H])
            f = jax.nn.sigmoid(gates[:, 1 * H:2 * H])
            g = jnp.tanh(gates[:, 2 * H:3 * H])
            o = jax.nn.sigmoid(gates[:, 3 * H:4 * H])
            c_new = f * c + i * g
            h_new = o * jnp.tanh(c_new)
            return (h_new, c_new), h_new

        (hn, cn), ys = jax.lax.scan(step, (h0[l], c0[l]), layer_in)
        layer_in = ys
        h_out.append(hn)
        c_out.append(cn)
    return layer_in, (jnp.stack(h_out), jnp.stack(c_out))


if __name__ == "__main__":
    # Small shapes consistent with the module.
    seq_len, batch, input_dim, hidden_dim, num_layers = 8, 4, 16, 32, 2

    key = jax.random.PRNGKey(0)
    keys = jax.random.split(key, 3 + 4 * num_layers)
    x = jax.random.normal(keys[0], (seq_len, batch, input_dim), dtype=jnp.float32)

    # init_hidden: kaiming_normal_ on zeros(num_layers, batch, hidden)
    # fan_in = batch * hidden_dim, gain = sqrt(2)  ->  std = sqrt(2 / fan_in)
    std_h = math.sqrt(2.0 / (batch * hidden_dim))
    h0 = std_h * jax.random.normal(keys[1], (num_layers, batch, hidden_dim),
                                   dtype=jnp.float32)
    c0 = std_h * jax.random.normal(keys[2], (num_layers, batch, hidden_dim),
                                   dtype=jnp.float32)

    # nn.LSTM parameter init: uniform(-1/sqrt(H), 1/sqrt(H)); biases b_ih+b_hh fused.
    bound = 1.0 / math.sqrt(hidden_dim)
    params = []
    for l in range(num_layers):
        in_d = input_dim if l == 0 else hidden_dim
        k0, k1, k2, k3 = keys[3 + 4 * l: 3 + 4 * (l + 1)]
        w_ih = jax.random.uniform(k0, (4 * hidden_dim, in_d),
                                  minval=-bound, maxval=bound, dtype=jnp.float32)
        w_hh = jax.random.uniform(k1, (4 * hidden_dim, hidden_dim),
                                  minval=-bound, maxval=bound, dtype=jnp.float32)
        b_ih = jax.random.uniform(k2, (4 * hidden_dim,),
                                  minval=-bound, maxval=bound, dtype=jnp.float32)
        b_hh = jax.random.uniform(k3, (4 * hidden_dim,),
                                  minval=-bound, maxval=bound, dtype=jnp.float32)
        params.append((w_ih.T, w_hh.T, (b_ih + b_hh)[None, :]))

    out, (h_n, c_n) = encoder_lstm_forward(x, params, h0, c0)
    jax.block_until_ready((out, h_n, c_n))

    ref_out, (ref_h, ref_c) = _reference_lstm(x, params, h0, c0)
    assert out.shape == (seq_len, batch, hidden_dim)
    assert h_n.shape == (num_layers, batch, hidden_dim)
    assert c_n.shape == (num_layers, batch, hidden_dim)
    assert jnp.allclose(out, ref_out, atol=1e-4), "output mismatch"
    assert jnp.allclose(h_n, ref_h, atol=1e-4), "h_n mismatch"
    assert jnp.allclose(c_n, ref_c, atol=1e-4), "c_n mismatch"

    print("KERNEL_OK")
</pallas_src>

<mosaic_0001>
module attributes {stable_mosaic.version = 11 : i64} {
  func.func @_lstm_layer_kernel(%arg0: i32, %arg1: memref<64x16xf32, #tpu.memory_space<vmem>>, %arg2: memref<16x512xf32, #tpu.memory_space<vmem>>, %arg3: memref<128x512xf32, #tpu.memory_space<vmem>>, %arg4: memref<1x512xf32, #tpu.memory_space<vmem>>, %arg5: memref<8x128xf32, #tpu.memory_space<vmem>>, %arg6: memref<8x128xf32, #tpu.memory_space<vmem>>, %arg7: memref<64x128xf32, #tpu.memory_space<vmem>>, %arg8: memref<8x128xf32, #tpu.memory_space<vmem>>, %arg9: memref<8x128xf32, #tpu.memory_space<vmem>>, %arg10: memref<8x128xf32, #tpu.memory_space<vmem>>, %arg11: memref<8x128xf32, #tpu.memory_space<vmem>>, %arg12: memref<64x512xf32, #tpu.memory_space<vmem>>) attributes {dimension_semantics = [#tpu.dimension_semantics<arbitrary>], iteration_bounds = array<i64: 1>, scalar_prefetch = 0 : i64, scratch_operands = 3 : i64, tpu.core_type = #tpu.core_type<tc>, window_params = [{transform_indices = @transform_0, window_bounds = array<i64: 64, 16>}, {pipeline_mode = #tpu.pipeline_mode<synchronous>, transform_indices = @transform_1, window_bounds = array<i64: 16, 512>}, {pipeline_mode = #tpu.pipeline_mode<synchronous>, transform_indices = @transform_2, window_bounds = array<i64: 128, 512>}, {pipeline_mode = #tpu.pipeline_mode<synchronous>, transform_indices = @transform_3, window_bounds = array<i64: 1, 512>}, {pipeline_mode = #tpu.pipeline_mode<synchronous>, transform_indices = @transform_4, window_bounds = array<i64: 8, 128>}, {pipeline_mode = #tpu.pipeline_mode<synchronous>, transform_indices = @transform_5, window_bounds = array<i64: 8, 128>}, {transform_indices = @transform_6, window_bounds = array<i64: 64, 128>}, {pipeline_mode = #tpu.pipeline_mode<synchronous>, transform_indices = @transform_7, window_bounds = array<i64: 8, 128>}, {pipeline_mode = #tpu.pipeline_mode<synchronous>, transform_indices = @transform_8, window_bounds = array<i64: 8, 128>}]} {
    %c0_i32 = arith.constant 0 : i32
    %0 = arith.cmpi eq, %arg0, %c0_i32 : i32
    %1 = arith.extui %0 : i1 to i32
    %c0_i32_0 = arith.constant 0 : i32
    %2 = arith.cmpi ne, %1, %c0_i32_0 : i32
    scf.if %2 {
      %c0_77 = arith.constant 0 : index
      %c0_78 = arith.constant 0 : index
      %282 = vector.load %arg5[%c0_77, %c0_78] : memref<8x128xf32, #tpu.memory_space<vmem>>, vector<8x128xf32>
      %c0_79 = arith.constant 0 : index
      %c0_80 = arith.constant 0 : index
      %283 = vector.load %arg10[%c0_79, %c0_80] : memref<8x128xf32, #tpu.memory_space<vmem>>, vector<8x128xf32>
      tpu.vector_store %arg10[%c0_79, %c0_80], %282 {strides = array<i32>} : memref<8x128xf32, #tpu.memory_space<vmem>>, vector<8x128xf32>,
      %c0_81 = arith.constant 0 : index
      %c0_82 = arith.constant 0 : index
      %284 = vector.load %arg6[%c0_81, %c0_82] : memref<8x128xf32, #tpu.memory_space<vmem>>, vector<8x128xf32>
      %c0_83 = arith.constant 0 : index
      %c0_84 = arith.constant 0 : index
      %285 = vector.load %arg11[%c0_83, %c0_84] : memref<8x128xf32, #tpu.memory_space<vmem>>, vector<8x128xf32>
      tpu.vector_store %arg11[%c0_83, %c0_84], %284 {strides = array<i32>} : memref<8x128xf32, #tpu.memory_space<vmem>>, vector<8x128xf32>,
    } else {
    }
    %c0 = arith.constant 0 : index
    %c0_1 = arith.constant 0 : index
    %3 = vector.load %arg1[%c0, %c0_1] : memref<64x16xf32, #tpu.memory_space<vmem>>, vector<64x16xf32>
    %c0_2 = arith.constant 0 : index
    %c0_3 = arith.constant 0 : index
    %4 = vector.load %arg2[%c0_2, %c0_3] : memref<16x512xf32, #tpu.memory_space<vmem>>, vector<16x512xf32>
    %cst = arith.constant dense<0.000000e+00> : vector<64x512xf32>
    %5 = tpu.matmul %3, %4, %cst {dimension_numbers = #tpu.dot_dimension_numbers<[1], [0], [0], [1], [0, 0, 1, 1], [], []>} : vector<64x16xf32>, vector<16x512xf32>, vector<64x512xf32> -> vector<64x512xf32>
    %c0_4 = arith.constant 0 : index
    %c0_5 = arith.constant 0 : index
    %6 = vector.load %arg4[%c0_4, %c0_5] : memref<1x512xf32, #tpu.memory_space<vmem>>, vector<1x512xf32>
    %7 = vector.broadcast %6 : vector<1x512xf32> to vector<64x512xf32>
    %8 = arith.addf %5, %7 : vector<64x512xf32>
    %c0_6 = arith.constant 0 : index
    %c0_7 = arith.constant 0 : index
    %9 = vector.load %arg12[%c0_6, %c0_7] : memref<64x512xf32, #tpu.memory_space<vmem>>, vector<64x512xf32>
    tpu.vector_store %arg12[%c0_6, %c0_7], %8 {strides = array<i32>} : memref<64x512xf32, #tpu.memory_space<vmem>>, vector<64x512xf32>,
    %c0_8 = arith.constant 0 : index
    %c0_9 = arith.constant 0 : index
    %10 = vector.load %arg3[%c0_8, %c0_9] : memref<128x512xf32, #tpu.memory_space<vmem>>, vector<128x512xf32>
    %c0_10 = arith.constant 0 : index
    %c0_11 = arith.constant 0 : index
    %11 = vector.load %arg10[%c0_10, %c0_11] : memref<8x128xf32, #tpu.memory_space<vmem>>, vector<8x128xf32>
    %c0_12 = arith.constant 0 : index
    %c0_13 = arith.constant 0 : index
    %12 = vector.load %arg11[%c0_12, %c0_13] : memref<8x128xf32, #tpu.memory_space<vmem>>, vector<8x128xf32>
    %c0_i32_14 = arith.constant 0 : i32
    %c8_i32 = arith.constant 8 : i32
    %13 = arith.muli %c0_i32_14, %c8_i32 : i32
    %14 = tpu.assume_multiple %13, 8 : i32
    %15 = arith.index_cast %14 : i32 to index
    %c0_15 = arith.constant 0 : index
    %16 = vector.load %arg12[%15, %c0_15] : memref<64x512xf32, #tpu.memory_space<vmem>>, vector<8x512xf32>
    %cst_16 = arith.constant dense<0.000000e+00> : vector<8x512xf32>
    %17 = tpu.matmul %11, %10, %cst_16 {dimension_numbers = #tpu.dot_dimension_numbers<[1], [0], [0], [1], [0, 0, 1, 1], [], []>} : vector<8x128xf32>, vector<128x512xf32>, vector<8x512xf32> -> vector<8x512xf32>
    %18 = arith.addf %16, %17 : vector<8x512xf32>
    %19 = vector.extract_strided_slice %18 {offsets = [0, 0], sizes = [8, 128], strides = [1, 1]} : vector<8x512xf32> to vector<8x128xf32>
    %20 = arith.negf %19 : vector<8x128xf32>
    %21 = math.exp %20 : vector<8x128xf32>
    %cst_17 = arith.constant 1.000000e+00 : f32
    %22 = vector.broadcast %cst_17 : f32 to vector<8x128xf32>
    %23 = arith.addf %22, %21 : vector<8x128xf32>
    %24 = arith.divf %22, %23 : vector<8x128xf32>
    %25 = vector.extract_strided_slice %18 {offsets = [0, 128], sizes = [8, 128], strides = [1, 1]} : vector<8x512xf32> to vector<8x128xf32>
    %26 = arith.negf %25 : vector<8x128xf32>
    %27 = math.exp %26 : vector<8x128xf32>
    %cst_18 = arith.constant 1.000000e+00 : f32
    %28 = vector.broadcast %cst_18 : f32 to vector<8x128xf32>
    %29 = arith.addf %28, %27 : vector<8x128xf32>
    %30 = arith.divf %28, %29 : vector<8x128xf32>
    %31 = vector.extract_strided_slice %18 {offsets = [0, 256], sizes = [8, 128], strides = [1, 1]} : vector<8x512xf32> to vector<8x128xf32>
    %32 = math.tanh %31 : vector<8x128xf32>
    %33 = vector.extract_strided_slice %18 {offsets = [0, 384], sizes = [8, 128], strides = [1, 1]} : vector<8x512xf32> to vector<8x128xf32>
    %34 = arith.negf %33 : vector<8x128xf32>
    %35 = math.exp %34 : vector<8x128xf32>
    %cst_19 = arith.constant 1.000000e+00 : f32
    %36 = vector.broadcast %cst_19 : f32 to vector<8x128xf32>
    %37 = arith.addf %36, %35 : vector<8x128xf32>
    %38 = arith.divf %36, %37 : vector<8x128xf32>
    %39 = arith.mulf %30, %12 : vector<8x128xf32>
    %40 = arith.mulf %24, %32 : vector<8x128xf32>
    %41 = arith.addf %39, %40 : vector<8x128xf32>
    %42 = math.tanh %41 : vector<8x128xf32>
    %43 = arith.mulf %38, %42 : vector<8x128xf32>
    %44 = arith.index_cast %14 : i32 to index
    %c0_20 = arith.constant 0 : index
    %45 = vector.load %arg7[%44, %c0_20] : memref<64x128xf32, #tpu.memory_space<vmem>>, vector<8x128xf32>
    tpu.vector_store %arg7[%44, %c0_20], %43 {strides = array<i32>} : memref<64x128xf32, #tpu.memory_space<vmem>>, vector<8x128xf32>,
    %c1_i32 = arith.constant 1 : i32
    %c8_i32_21 = arith.constant 8 : i32
    %46 = arith.muli %c1_i32, %c8_i32_21 : i32
    %47 = tpu.assume_multiple %46, 8 : i32
    %48 = arith.index_cast %47 : i32 to index
    %c0_22 = arith.constant 0 : index
    %49 = vector.load %arg12[%48, %c0_22] : memref<64x512xf32, #tpu.memory_space<vmem>>, vector<8x512xf32>
    %cst_23 = arith.constant dense<0.000000e+00> : vector<8x512xf32>
    %50 = tpu.matmul %43, %10, %cst_23 {dimension_numbers = #tpu.dot_dimension_numbers<[1], [0], [0], [1], [0, 0, 1, 1], [], []>} : vector<8x128xf32>, vector<128x512xf32>, vector<8x512xf32> -> vector<8x512xf32>
    %51 = arith.addf %49, %50 : vector<8x512xf32>
    %52 = vector.extract_strided_slice %51 {offsets = [0, 0], sizes = [8, 128], strides = [1, 1]} : vector<8x512xf32> to vector<8x128xf32>
    %53 = arith.negf %52 : vector<8x128xf32>
    %54 = math.exp %53 : vector<8x128xf32>
    %cst_24 = arith.constant 1.000000e+00 : f32
    %55 = vector.broadcast %cst_24 : f32 to vector<8x128xf32>
    %56 = arith.addf %55, %54 : vector<8x128xf32>
    %57 = arith.divf %55, %56 : vector<8x128xf32>
    %58 = vector.extract_strided_slice %51 {offsets = [0, 128], sizes = [8, 128], strides = [1, 1]} : vector<8x512xf32> to vector<8x128xf32>
    %59 = arith.negf %58 : vector<8x128xf32>
    %60 = math.exp %59 : vector<8x128xf32>
    %cst_25 = arith.constant 1.000000e+00 : f32
    %61 = vector.broadcast %cst_25 : f32 to vector<8x128xf32>
    %62 = arith.addf %61, %60 : vector<8x128xf32>
    %63 = arith.divf %61, %62 : vector<8x128xf32>
    %64 = vector.extract_strided_slice %51 {offsets = [0, 256], sizes = [8, 128], strides = [1, 1]} : vector<8x512xf32> to vector<8x128xf32>
    %65 = math.tanh %64 : vector<8x128xf32>
    %66 = vector.extract_strided_slice %51 {offsets = [0, 384], sizes = [8, 128], strides = [1, 1]} : vector<8x512xf32> to vector<8x128xf32>
    %67 = arith.negf %66 : vector<8x128xf32>
    %68 = math.exp %67 : vector<8x128xf32>
    %cst_26 = arith.constant 1.000000e+00 : f32
    %69 = vector.broadcast %cst_26 : f32 to vector<8x128xf32>
    %70 = arith.addf %69, %68 : vector<8x128xf32>
    %71 = arith.divf %69, %70 : vector<8x128xf32>
    %72 = arith.mulf %63, %41 : vector<8x128xf32>
    %73 = arith.mulf %57, %65 : vector<8x128xf32>
    %74 = arith.addf %72, %73 : vector<8x128xf32>
    %75 = math.tanh %74 : vector<8x128xf32>
    %76 = arith.mulf %71, %75 : vector<8x128xf32>
    %77 = arith.index_cast %47 : i32 to index
    %c0_27 = arith.constant 0 : index
    %78 = vector.load %arg7[%77, %c0_27] : memref<64x128xf32, #tpu.memory_space<vmem>>, vector<8x128xf32>
    tpu.vector_store %arg7[%77, %c0_27], %76 {strides = array<i32>} : memref<64x128xf32, #tpu.memory_space<vmem>>, vector<8x128xf32>,
    %c2_i32 = arith.constant 2 : i32
    %c8_i32_28 = arith.constant 8 : i32
    %79 = arith.muli %c2_i32, %c8_i32_28 : i32
    %80 = tpu.assume_multiple %79, 8 : i32
    %81 = arith.index_cast %80 : i32 to index
    %c0_29 = arith.constant 0 : index
    %82 = vector.load %arg12[%81, %c0_29] : memref<64x512xf32, #tpu.memory_space<vmem>>, vector<8x512xf32>
    %cst_30 = arith.constant dense<0.000000e+00> : vector<8x512xf32>
    %83 = tpu.matmul %76, %10, %cst_30 {dimension_numbers = #tpu.dot_dimension_numbers<[1], [0], [0], [1], [0, 0, 1, 1], [], []>} : vector<8x128xf32>, vector<128x512xf32>, vector<8x512xf32> -> vector<8x512xf32>
    %84 = arith.addf %82, %83 : vector<8x512xf32>
    %85 = vector.extract_strided_slice %84 {offsets = [0, 0], sizes = [8, 128], strides = [1, 1]} : vector<8x512xf32> to vector<8x128xf32>
    %86 = arith.negf %85 : vector<8x128xf32>
    %87 = math.exp %86 : vector<8x128xf32>
    %cst_31 = arith.constant 1.000000e+00 : f32
    %88 = vector.broadcast %cst_31 : f32 to vector<8x128xf32>
    %89 = arith.addf %88, %87 : vector<8x128xf32>
    %90 = arith.divf %88, %89 : vector<8x128xf32>
    %91 = vector.extract_strided_slice %84 {offsets = [0, 128], sizes = [8, 128], strides = [1, 1]} : vector<8x512xf32> to vector<8x128xf32>
    %92 = arith.negf %91 : vector<8x128xf32>
    %93 = math.exp %92 : vector<8x128xf32>
    %cst_32 = arith.constant 1.000000e+00 : f32
    %94 = vector.broadcast %cst_32 : f32 to vector<8x128xf32>
    %95 = arith.addf %94, %93 : vector<8x128xf32>
    %96 = arith.divf %94, %95 : vector<8x128xf32>
    %97 = vector.extract_strided_slice %84 {offsets = [0, 256], sizes = [8, 128], strides = [1, 1]} : vector<8x512xf32> to vector<8x128xf32>
    %98 = math.tanh %97 : vector<8x128xf32>
    %99 = vector.extract_strided_slice %84 {offsets = [0, 384], sizes = [8, 128], strides = [1, 1]} : vector<8x512xf32> to vector<8x128xf32>
    %100 = arith.negf %99 : vector<8x128xf32>
    %101 = math.exp %100 : vector<8x128xf32>
    %cst_33 = arith.constant 1.000000e+00 : f32
    %102 = vector.broadcast %cst_33 : f32 to vector<8x128xf32>
    %103 = arith.addf %102, %101 : vector<8x128xf32>
    %104 = arith.divf %102, %103 : vector<8x128xf32>
    %105 = arith.mulf %96, %74 : vector<8x128xf32>
    %106 = arith.mulf %90, %98 : vector<8x128xf32>
    %107 = arith.addf %105, %106 : vector<8x128xf32>
    %108 = math.tanh %107 : vector<8x128xf32>
    %109 = arith.mulf %104, %108 : vector<8x128xf32>
    %110 = arith.index_cast %80 : i32 to index
    %c0_34 = arith.constant 0 : index
    %111 = vector.load %arg7[%110, %c0_34] : memref<64x128xf32, #tpu.memory_space<vmem>>, vector<8x128xf32>
    tpu.vector_store %arg7[%110, %c0_34], %109 {strides = array<i32>} : memref<64x128xf32, #tpu.memory_space<vmem>>, vector<8x128xf32>,
    %c3_i32 = arith.constant 3 : i32
    %c8_i32_35 = arith.constant 8 : i32
    %112 = arith.muli %c3_i32, %c8_i32_35 : i32
    %113 = tpu.assume_multiple %112, 8 : i32
    %114 = arith.index_cast %113 : i32 to index
    %c0_36 = arith.constant 0 : index
    %115 = vector.load %arg12[%114, %c0_36] : memref<64x512xf32, #tpu.memory_space<vmem>>, vector<8x512xf32>
    %cst_37 = arith.constant dense<0.000000e+00> : vector<8x512xf32>
    %116 = tpu.matmul %109, %10, %cst_37 {dimension_numbers = #tpu.dot_dimension_numbers<[1], [0], [0], [1], [0, 0, 1, 1], [], []>} : vector<8x128xf32>, vector<128x512xf32>, vector<8x512xf32> -> vector<8x512xf32>
    %117 = arith.addf %115, %116 : vector<8x512xf32>
    %118 = vector.extract_strided_slice %117 {offsets = [0, 0], sizes = [8, 128], strides = [1, 1]} : vector<8x512xf32> to vector<8x128xf32>
    %119 = arith.negf %118 : vector<8x128xf32>
    %120 = math.exp %119 : vector<8x128xf32>
    %cst_38 = arith.constant 1.000000e+00 : f32
    %121 = vector.broadcast %cst_38 : f32 to vector<8x128xf32>
    %122 = arith.addf %121, %120 : vector<8x128xf32>
    %123 = arith.divf %121, %122 : vector<8x128xf32>
    %124 = vector.extract_strided_slice %117 {offsets = [0, 128], sizes = [8, 128], strides = [1, 1]} : vector<8x512xf32> to vector<8x128xf32>
    %125 = arith.negf %124 : vector<8x128xf32>
    %126 = math.exp %125 : vector<8x128xf32>
    %cst_39 = arith.constant 1.000000e+00 : f32
    %127 = vector.broadcast %cst_39 : f32 to vector<8x128xf32>
    %128 = arith.addf %127, %126 : vector<8x128xf32>
    %129 = arith.divf %127, %128 : vector<8x128xf32>
    %130 = vector.extract_strided_slice %117 {offsets = [0, 256], sizes = [8, 128], strides = [1, 1]} : vector<8x512xf32> to vector<8x128xf32>
    %131 = math.tanh %130 : vector<8x128xf32>
    %132 = vector.extract_strided_slice %117 {offsets = [0, 384], sizes = [8, 128], strides = [1, 1]} : vector<8x512xf32> to vector<8x128xf32>
    %133 = arith.negf %132 : vector<8x128xf32>
    %134 = math.exp %133 : vector<8x128xf32>
    %cst_40 = arith.constant 1.000000e+00 : f32
    %135 = vector.broadcast %cst_40 : f32 to vector<8x128xf32>
    %136 = arith.addf %135, %134 : vector<8x128xf32>
    %137 = arith.divf %135, %136 : vector<8x128xf32>
    %138 = arith.mulf %129, %107 : vector<8x128xf32>
    %139 = arith.mulf %123, %131 : vector<8x128xf32>
    %140 = arith.addf %138, %139 : vector<8x128xf32>
    %141 = math.tanh %140 : vector<8x128xf32>
    %142 = arith.mulf %137, %141 : vector<8x128xf32>
    %143 = arith.index_cast %113 : i32 to index
    %c0_41 = arith.constant 0 : index
    %144 = vector.load %arg7[%143, %c0_41] : memref<64x128xf32, #tpu.memory_space<vmem>>, vector<8x128xf32>
    tpu.vector_store %arg7[%143, %c0_41], %142 {strides = array<i32>} : memref<64x128xf32, #tpu.memory_space<vmem>>, vector<8x128xf32>,
    %c4_i32 = arith.constant 4 : i32
    %c8_i32_42 = arith.constant 8 : i32
    %145 = arith.muli %c4_i32, %c8_i32_42 : i32
    %146 = tpu.assume_multiple %145, 8 : i32
    %147 = arith.index_cast %146 : i32 to index
    %c0_43 = arith.constant 0 : index
    %148 = vector.load %arg12[%147, %c0_43] : memref<64x512xf32, #tpu.memory_space<vmem>>, vector<8x512xf32>
    %cst_44 = arith.constant dense<0.000000e+00> : vector<8x512xf32>
    %149 = tpu.matmul %142, %10, %cst_44 {dimension_numbers = #tpu.dot_dimension_numbers<[1], [0], [0], [1], [0, 0, 1, 1], [], []>} : vector<8x128xf32>, vector<128x512xf32>, vector<8x512xf32> -> vector<8x512xf32>
    %150 = arith.addf %148, %149 : vector<8x512xf32>
    %151 = vector.extract_strided_slice %150 {offsets = [0, 0], sizes = [8, 128], strides = [1, 1]} : vector<8x512xf32> to vector<8x128xf32>
    %152 = arith.negf %151 : vector<8x128xf32>
    %153 = math.exp %152 : vector<8x128xf32>
    %cst_45 = arith.constant 1.000000e+00 : f32
    %154 = vector.broadcast %cst_45 : f32 to vector<8x128xf32>
    %155 = arith.addf %154, %153 : vector<8x128xf32>
    %156 = arith.divf %154, %155 : vector<8x128xf32>
    %157 = vector.extract_strided_slice %150 {offsets = [0, 128], sizes = [8, 128], strides = [1, 1]} : vector<8x512xf32> to vector<8x128xf32>
    %158 = arith.negf %157 : vector<8x128xf32>
    %159 = math.exp %158 : vector<8x128xf32>
    %cst_46 = arith.constant 1.000000e+00 : f32
    %160 = vector.broadcast %cst_46 : f32 to vector<8x128xf32>
    %161 = arith.addf %160, %159 : vector<8x128xf32>
    %162 = arith.divf %160, %161 : vector<8x128xf32>
    %163 = vector.extract_strided_slice %150 {offsets = [0, 256], sizes = [8, 128], strides = [1, 1]} : vector<8x512xf32> to vector<8x128xf32>
    %164 = math.tanh %163 : vector<8x128xf32>
    %165 = vector.extract_strided_slice %150 {offsets = [0, 384], sizes = [8, 128], strides = [1, 1]} : vector<8x512xf32> to vector<8x128xf32>
    %166 = arith.negf %165 : vector<8x128xf32>
    %167 = math.exp %166 : vector<8x128xf32>
    %cst_47 = arith.constant 1.000000e+00 : f32
    %168 = vector.broadcast %cst_47 : f32 to vector<8x128xf32>
    %169 = arith.addf %168, %167 : vector<8x128xf32>
    %170 = arith.divf %168, %169 : vector<8x128xf32>
    %171 = arith.mulf %162, %140 : vector<8x128xf32>
    %172 = arith.mulf %156, %164 : vector<8x128xf32>
    %173 = arith.addf %171, %172 : vector<8x128xf32>
    %174 = math.tanh %173 : vector<8x128xf32>
    %175 = arith.mulf %170, %174 : vector<8x128xf32>
    %176 = arith.index_cast %146 : i32 to index
    %c0_48 = arith.constant 0 : index
    %177 = vector.load %arg7[%176, %c0_48] : memref<64x128xf32, #tpu.memory_space<vmem>>, vector<8x128xf32>
    tpu.vector_store %arg7[%176, %c0_48], %175 {strides = array<i32>} : memref<64x128xf32, #tpu.memory_space<vmem>>, vector<8x128xf32>,
    %c5_i32 = arith.constant 5 : i32
    %c8_i32_49 = arith.constant 8 : i32
    %178 = arith.muli %c5_i32, %c8_i32_49 : i32
    %179 = tpu.assume_multiple %178, 8 : i32
    %180 = arith.index_cast %179 : i32 to index
    %c0_50 = arith.constant 0 : index
    %181 = vector.load %arg12[%180, %c0_50] : memref<64x512xf32, #tpu.memory_space<vmem>>, vector<8x512xf32>
    %cst_51 = arith.constant dense<0.000000e+00> : vector<8x512xf32>
    %182 = tpu.matmul %175, %10, %cst_51 {dimension_numbers = #tpu.dot_dimension_numbers<[1], [0], [0], [1], [0, 0, 1, 1], [], []>} : vector<8x128xf32>, vector<128x512xf32>, vector<8x512xf32> -> vector<8x512xf32>
    %183 = arith.addf %181, %182 : vector<8x512xf32>
    %184 = vector.extract_strided_slice %183 {offsets = [0, 0], sizes = [8, 128], strides = [1, 1]} : vector<8x512xf32> to vector<8x128xf32>
    %185 = arith.negf %184 : vector<8x128xf32>
    %186 = math.exp %185 : vector<8x128xf32>
    %cst_52 = arith.constant 1.000000e+00 : f32
    %187 = vector.broadcast %cst_52 : f32 to vector<8x128xf32>
    %188 = arith.addf %187, %186 : vector<8x128xf32>
    %189 = arith.divf %187, %188 : vector<8x128xf32>
    %190 = vector.extract_strided_slice %183 {offsets = [0, 128], sizes = [8, 128], strides = [1, 1]} : vector<8x512xf32> to vector<8x128xf32>
    %191 = arith.negf %190 : vector<8x128xf32>
    %192 = math.exp %191 : vector<8x128xf32>
    %cst_53 = arith.constant 1.000000e+00 : f32
    %193 = vector.broadcast %cst_53 : f32 to vector<8x128xf32>
    %194 = arith.addf %193, %192 : vector<8x128xf32>
    %195 = arith.divf %193, %194 : vector<8x128xf32>
    %196 = vector.extract_strided_slice %183 {offsets = [0, 256], sizes = [8, 128], strides = [1, 1]} : vector<8x512xf32> to vector<8x128xf32>
    %197 = math.tanh %196 : vector<8x128xf32>
    %198 = vector.extract_strided_slice %183 {offsets = [0, 384], sizes = [8, 128], strides = [1, 1]} : vector<8x512xf32> to vector<8x128xf32>
    %199 = arith.negf %198 : vector<8x128xf32>
    %200 = math.exp %199 : vector<8x128xf32>
    %cst_54 = arith.constant 1.000000e+00 : f32
    %201 = vector.broadcast %cst_54 : f32 to vector<8x128xf32>
    %202 = arith.addf %201, %200 : vector<8x128xf32>
    %203 = arith.divf %201, %202 : vector<8x128xf32>
    %204 = arith.mulf %195, %173 : vector<8x128xf32>
    %205 = arith.mulf %189, %197 : vector<8x128xf32>
    %206 = arith.addf %204, %205 : vector<8x128xf32>
    %207 = math.tanh %206 : vector<8x128xf32>
    %208 = arith.mulf %203, %207 : vector<8x128xf32>
    %209 = arith.index_cast %179 : i32 to index
    %c0_55 = arith.constant 0 : index
    %210 = vector.load %arg7[%209, %c0_55] : memref<64x128xf32, #tpu.memory_space<vmem>>, vector<8x128xf32>
    tpu.vector_store %arg7[%209, %c0_55], %208 {strides = array<i32>} : memref<64x128xf32, #tpu.memory_space<vmem>>, vector<8x128xf32>,
    %c6_i32 = arith.constant 6 : i32
    %c8_i32_56 = arith.constant 8 : i32
    %211 = arith.muli %c6_i32, %c8_i32_56 : i32
    %212 = tpu.assume_multiple %211, 8 : i32
    %213 = arith.index_cast %212 : i32 to index
    %c0_57 = arith.constant 0 : index
    %214 = vector.load %arg12[%213, %c0_57] : memref<64x512xf32, #tpu.memory_space<vmem>>, vector<8x512xf32>
    %cst_58 = arith.constant dense<0.000000e+00> : vector<8x512xf32>
    %215 = tpu.matmul %208, %10, %cst_58 {dimension_numbers = #tpu.dot_dimension_numbers<[1], [0], [0], [1], [0, 0, 1, 1], [], []>} : vector<8x128xf32>, vector<128x512xf32>, vector<8x512xf32> -> vector<8x512xf32>
    %216 = arith.addf %214, %215 : vector<8x512xf32>
    %217 = vector.extract_strided_slice %216 {offsets = [0, 0], sizes = [8, 128], strides = [1, 1]} : vector<8x512xf32> to vector<8x128xf32>
    %218 = arith.negf %217 : vector<8x128xf32>
    %219 = math.exp %218 : vector<8x128xf32>
    %cst_59 = arith.constant 1.000000e+00 : f32
    %220 = vector.broadcast %cst_59 : f32 to vector<8x128xf32>
    %221 = arith.addf %220, %219 : vector<8x128xf32>
    %222 = arith.divf %220, %221 : vector<8x128xf32>
    %223 = vector.extract_strided_slice %216 {offsets = [0, 128], sizes = [8, 128], strides = [1, 1]} : vector<8x512xf32> to vector<8x128xf32>
    %224 = arith.negf %223 : vector<8x128xf32>
    %225 = math.exp %224 : vector<8x128xf32>
    %cst_60 = arith.constant 1.000000e+00 : f32
    %226 = vector.broadcast %cst_60 : f32 to vector<8x128xf32>
    %227 = arith.addf %226, %225 : vector<8x128xf32>
    %228 = arith.divf %226, %227 : vector<8x128xf32>
    %229 = vector.extract_strided_slice %216 {offsets = [0, 256], sizes = [8, 128], strides = [1, 1]} : vector<8x512xf32> to vector<8x128xf32>
    %230 = math.tanh %229 : vector<8x128xf32>
    %231 = vector.extract_strided_slice %216 {offsets = [0, 384], sizes = [8, 128], strides = [1, 1]} : vector<8x512xf32> to vector<8x128xf32>
    %232 = arith.negf %231 : vector<8x128xf32>
    %233 = math.exp %232 : vector<8x128xf32>
    %cst_61 = arith.constant 1.000000e+00 : f32
    %234 = vector.broadcast %cst_61 : f32 to vector<8x128xf32>
    %235 = arith.addf %234, %233 : vector<8x128xf32>
    %236 = arith.divf %234, %235 : vector<8x128xf32>
    %237 = arith.mulf %228, %206 : vector<8x128xf32>
    %238 = arith.mulf %222, %230 : vector<8x128xf32>
    %239 = arith.addf %237, %238 : vector<8x128xf32>
    %240 = math.tanh %239 : vector<8x128xf32>
    %241 = arith.mulf %236, %240 : vector<8x128xf32>
    %242 = arith.index_cast %212 : i32 to index
    %c0_62 = arith.constant 0 : index
    %243 = vector.load %arg7[%242, %c0_62] : memref<64x128xf32, #tpu.memory_space<vmem>>, vector<8x128xf32>
    tpu.vector_store %arg7[%242, %c0_62], %241 {strides = array<i32>} : memref<64x128xf32, #tpu.memory_space<vmem>>, vector<8x128xf32>,
    %c7_i32 = arith.constant 7 : i32
    %c8_i32_63 = arith.constant 8 : i32
    %244 = arith.muli %c7_i32, %c8_i32_63 : i32
    %245 = tpu.assume_multiple %244, 8 : i32
    %246 = arith.index_cast %245 : i32 to index
    %c0_64 = arith.constant 0 : index
    %247 = vector.load %arg12[%246, %c0_64] : memref<64x512xf32, #tpu.memory_space<vmem>>, vector<8x512xf32>
    %cst_65 = arith.constant dense<0.000000e+00> : vector<8x512xf32>
    %248 = tpu.matmul %241, %10, %cst_65 {dimension_numbers = #tpu.dot_dimension_numbers<[1], [0], [0], [1], [0, 0, 1, 1], [], []>} : vector<8x128xf32>, vector<128x512xf32>, vector<8x512xf32> -> vector<8x512xf32>
    %249 = arith.addf %247, %248 : vector<8x512xf32>
    %250 = vector.extract_strided_slice %249 {offsets = [0, 0], sizes = [8, 128], strides = [1, 1]} : vector<8x512xf32> to vector<8x128xf32>
    %251 = arith.negf %250 : vector<8x128xf32>
    %252 = math.exp %251 : vector<8x128xf32>
    %cst_66 = arith.constant 1.000000e+00 : f32
    %253 = vector.broadcast %cst_66 : f32 to vector<8x128xf32>
    %254 = arith.addf %253, %252 : vector<8x128xf32>
    %255 = arith.divf %253, %254 : vector<8x128xf32>
    %256 = vector.extract_strided_slice %249 {offsets = [0, 128], sizes = [8, 128], strides = [1, 1]} : vector<8x512xf32> to vector<8x128xf32>
    %257 = arith.negf %256 : vector<8x128xf32>
    %258 = math.exp %257 : vector<8x128xf32>
    %cst_67 = arith.constant 1.000000e+00 : f32
    %259 = vector.broadcast %cst_67 : f32 to vector<8x128xf32>
    %260 = arith.addf %259, %258 : vector<8x128xf32>
    %261 = arith.divf %259, %260 : vector<8x128xf32>
    %262 = vector.extract_strided_slice %249 {offsets = [0, 256], sizes = [8, 128], strides = [1, 1]} : vector<8x512xf32> to vector<8x128xf32>
    %263 = math.tanh %262 : vector<8x128xf32>
    %264 = vector.extract_strided_slice %249 {offsets = [0, 384], sizes = [8, 128], strides = [1, 1]} : vector<8x512xf32> to vector<8x128xf32>
    %265 = arith.negf %264 : vector<8x128xf32>
    %266 = math.exp %265 : vector<8x128xf32>
    %cst_68 = arith.constant 1.000000e+00 : f32
    %267 = vector.broadcast %cst_68 : f32 to vector<8x128xf32>
    %268 = arith.addf %267, %266 : vector<8x128xf32>
    %269 = arith.divf %267, %268 : vector<8x128xf32>
    %270 = arith.mulf %261, %239 : vector<8x128xf32>
    %271 = arith.mulf %255, %263 : vector<8x128xf32>
    %272 = arith.addf %270, %271 : vector<8x128xf32>
    %273 = math.tanh %272 : vector<8x128xf32>
    %274 = arith.mulf %269, %273 : vector<8x128xf32>
    %275 = arith.index_cast %245 : i32 to index
    %c0_69 = arith.constant 0 : index
    %276 = vector.load %arg7[%275, %c0_69] : memref<64x128xf32, #tpu.memory_space<vmem>>, vector<8x128xf32>
    tpu.vector_store %arg7[%275, %c0_69], %274 {strides = array<i32>} : memref<64x128xf32, #tpu.memory_space<vmem>>, vector<8x128xf32>,
    %c8_i32_70 = arith.constant 8 : i32
    %c0_71 = arith.constant 0 : index
    %c0_72 = arith.constant 0 : index
    %277 = vector.load %arg10[%c0_71, %c0_72] : memref<8x128xf32, #tpu.memory_space<vmem>>, vector<8x128xf32>
    tpu.vector_store %arg10[%c0_71, %c0_72], %274 {strides = array<i32>} : memref<8x128xf32, #tpu.memory_space<vmem>>, vector<8x128xf32>,
    %c0_73 = arith.constant 0 : index
    %c0_74 = arith.constant 0 : index
    %278 = vector.load %arg11[%c0_73, %c0_74] : memref<8x128xf32, #tpu.memory_space<vmem>>, vector<8x128xf32>
    tpu.vector_store %arg11[%c0_73, %c0_74], %272 {strides = array<i32>} : memref<8x128xf32, #tpu.memory_space<vmem>>, vector<8x128xf32>,
    %c0_i32_75 = arith.constant 0 : i32
    %279 = arith.cmpi eq, %arg0, %c0_i32_75 : i32
    %280 = arith.extui %279 : i1 to i32
    %c0_i32_76 = arith.constant 0 : i32
    %281 = arith.cmpi ne, %280, %c0_i32_76 : i32
    scf.if %281 {
      %c0_77 = arith.constant 0 : index
      %c0_78 = arith.constant 0 : index
      %282 = vector.load %arg8[%c0_77, %c0_78] : memref<8x128xf32, #tpu.memory_space<vmem>>, vector<8x128xf32>
      tpu.vector_store %arg8[%c0_77, %c0_78], %274 {strides = array<i32>} : memref<8x128xf32, #tpu.memory_space<vmem>>, vector<8x128xf32>,
      %c0_79 = arith.constant 0 : index
      %c0_80 = arith.constant 0 : index
      %283 = vector.load %arg9[%c0_79, %c0_80] : memref<8x128xf32, #tpu.memory_space<vmem>>, vector<8x128xf32>
      tpu.vector_store %arg9[%c0_79, %c0_80], %272 {strides = array<i32>} : memref<8x128xf32, #tpu.memory_space<vmem>>, vector<8x128xf32>,
    } else {
    }
    return
  }
  func.func @transform_0(%arg0: i32) -> (i32, i32) {
    %c0_i32 = arith.constant 0 : i32
    %c0_i32_0 = arith.constant 0 : i32
    return %arg0, %c0_i32 : i32, i32
  }
  func.func @transform_1(%arg0: i32) -> (i32, i32) {
    %c0_i32 = arith.constant 0 : i32
    %c0_i32_0 = arith.constant 0 : i32
    %c0_i32_1 = arith.constant 0 : i32
    return %c0_i32, %c0_i32_0 : i32, i32
  }
  func.func @transform_2(%arg0: i32) -> (i32, i32) {
    %c0_i32 = arith.constant 0 : i32
    %c0_i32_0 = arith.constant 0 : i32
    %c0_i32_1 = arith.constant 0 : i32
    return %c0_i32, %c0_i32_0 : i32, i32
  }
  func.func @transform_3(%arg0: i32) -> (i32, i32) {
    %c0_i32 = arith.constant 0 : i32
    %c0_i32_0 = arith.constant 0 : i32
    %c0_i32_1 = arith.constant 0 : i32
    return %c0_i32, %c0_i32_0 : i32, i32
  }
  func.func @transform_4(%arg0: i32) -> (i32, i32) {
    %c0_i32 = arith.constant 0 : i32
    %c0_i32_0 = arith.constant 0 : i32
    %c0_i32_1 = arith.constant 0 : i32
    return %c0_i32, %c0_i32_0 : i32, i32
  }
  func.func @transform_5(%arg0: i32) -> (i32, i32) {
    %c0_i32 = arith.constant 0 : i32
    %c0_i32_0 = arith.constant 0 : i32
    %c0_i32_1 = arith.constant 0 : i32
    return %c0_i32, %c0_i32_0 : i32, i32
  }
  func.func @transform_6(%arg0: i32) -> (i32, i32) {
    %c0_i32 = arith.constant 0 : i32
    %c0_i32_0 = arith.constant 0 : i32
    return %arg0, %c0_i32 : i32, i32
  }
  func.func @transform_7(%arg0: i32) -> (i32, i32) {
    %c0_i32 = arith.constant 0 : i32
    %c0_i32_0 = arith.constant 0 : i32
    %c0_i32_1 = arith.constant 0 : i32
    return %c0_i32, %c0_i32_0 : i32, i32
  }
  func.func @transform_8(%arg0: i32) -> (i32, i32) {
    %c0_i32 = arith.constant 0 : i32
    %c0_i32_0 = arith.constant 0 : i32
    %c0_i32_1 = arith.constant 0 : i32
    return %c0_i32, %c0_i32_0 : i32, i32
  }
}

</mosaic_0001>

<bundles_post_ra>
// kernel: tpu_custom_call.1
= control target key start
LH: loop header
LB: loop body
LE: loop exit
PB: predicated region body
PF: predicated region fallthrough
CT: control target
= control target key end

     0   :  { %14 = vsyncpa [#allocation6], 0  ;;  %s3127_s0 = inlined_call_operand.vmem [shape: f32[64,16], index: 0, kind: input, shape index: {}]   ;;  %s3128_s1 = inlined_call_operand.vmem [shape: f32[16,512], index: 1, kind: input, shape index: {}]   ;;  %s3129_s2 = inlined_call_operand.hbm [shape: f32[128,512], index: 2, kind: input, shape index: {}]   ;;  %s3130_s3 = inlined_call_operand.hbm [shape: f32[1,512], index: 3, kind: input, shape index: {}]   ;;  %s3131_s4 = inlined_call_operand.vmem [shape: f32[8,128], index: 4, kind: input, shape index: {}]   ;;  %s3132_s5 = inlined_call_operand.vmem [shape: f32[8,128], index: 5, kind: input, shape index: {}]   ;;  %s3133_s6 = inlined_call_operand.hbm [shape: f32[64,128], index: 6, kind: output, shape index: {0}]   ;;  %s3134_s7 = inlined_call_operand.hbm [shape: f32[8,128], index: 7, kind: output, shape index: {1}]   ;;  %s3135_s8 = inlined_call_operand.hbm [shape: f32[8,128], index: 8, kind: output, shape index: {2}]  }
   0x1   :  { %15 = vsyncpa [#allocation9], 0 }
   0x2   :  { %16 = vsyncpa [#allocation7], 0 }
   0x3   :  { %17 = vsyncpa [#allocation12], 0  ;;  %s26_s29 = sshll.u32 %s3129_s2, 4  ;;  %s2076_s30 = smov [#allocation5]   ;;  %s27_s29 = int_to_ptr.hbm [resolvable:$true] %s26_s29 }
   0x4   :  { %s28_s9 = sshll.u32 %s2076_s30, 4  ;;  %s40_s12 = sshll.u32 %s3130_s3, 4  ;;  %s29_s9 = int_to_ptr.vmem [resolvable:$true] %s28_s9  ;;  %s41_s12 = int_to_ptr.hbm [resolvable:$true] %s40_s12 }
   0x5   :  { %s2077_s13 = smov 512   ;;  %s2078_s14 = smov 32  }
   0x6   :  { %34 = dma.hbm_to_vmem [thread:$0]  %s27_s29, 8192, %s29_s9, [#allocation6], %s2077_s13, %s2077_s13, %s2078_s14  }
   0x7   :  { %s2079_s15 = smov [#allocation8]  }
   0x8   :  { %s42_s16 = sshll.u32 %s2079_s15, 4  ;;  %s43_s16 = int_to_ptr.vmem [resolvable:$true] %s42_s16 }
   0x9   :  { %45 = dma.hbm_to_vmem [thread:$0]  %s41_s12, 64, %s43_s16, [#allocation9]  }
   0xa   :  { %2068 = dma.done.wait [#allocation6], 8192  }
   0xb   :  { %2069 = vsyncadd [#allocation6], 4294959104 }
   0xc   :  { %2070 = dma.done.wait [#allocation9], 64  }
   0xd   :  { %2071 = vsyncadd [#allocation9], 4294967232  ;;  %v78_v0 = vld [vmem:[%s3128_s1 + $0x20] sm:$0xff]  ;;  %v79_v1 = vld [vmem:[%s3128_s1 + $0x28] sm:$0xff]  ;;  %vm92_vm0 = vcmask 130048   ;;  %s1639_s27 = sshll.u32 %s3133_s6, 4  ;;  %s1640_s27 = int_to_ptr.hbm [resolvable:$true] %s1639_s27 }
   0xe   :  { %v80_v2 = vld [vmem:[%s3128_s1 + $0x30] sm:$0xff]  ;;  %131 = vmatpush.msra.mxu0 %v78_v0  ;;  %172 = vmatpush.msra.mxu1 %v79_v1  ;;  %v81_v3 = vld [vmem:[%s3128_s1 + $0x38] sm:$0xff]  ;;  %v74_v4 = vld [vmem:[%s3128_s1] sm:$0xff]  ;;  %s2081_s28 = smov [#allocation11]   ;;  %s1653_s10 = sshll.u32 %s3134_s7, 4  ;;  %s1654_s10 = int_to_ptr.hbm [resolvable:$true] %s1653_s10 }
   0xf   :  { %v75_v5 = vld [vmem:[%s3128_s1 + $0x8] sm:$0xff]  ;;  %213 = vmatpush.msra.mxu2 %v80_v2  ;;  %254 = vmatpush.msra.mxu3 %v81_v3  ;;  %v76_v6 = vld [vmem:[%s3128_s1 + $0x10] sm:$0xff]  ;;  %v77_v7 = vld [vmem:[%s3128_s1 + $0x18] sm:$0xff]  ;;  %s1651_s29 = sshll.u32 %s2081_s28, 4  ;;  %s2082_s1 = smov [#allocation13]   ;;  %s1652_s29 = int_to_ptr.vmem [resolvable:$true] %s1651_s29 }
  0x10   :  { %v66_v8 = vld [vmem:[%s3127_s0] sm:$0xff]  ;;  %132 = vmatpush.msra.mxu0 %v74_v4  ;;  %173 = vmatpush.msra.mxu1 %v75_v5  ;;  %v2165_v10 = vld [vmem:[#allocation5 + $0x1e8] sm:$0xff]  ;;  %v2169_v11 = vld [vmem:[#allocation5 + $0x1f8] sm:$0xff]  ;;  %s1662_s11 = sshll.u32 %s2082_s1, 4  ;;  %s1664_s14 = sshll.u32 %s3135_s8, 4  ;;  %s1663_s11 = int_to_ptr.vmem [resolvable:$true] %s1662_s11  ;;  %s1665_s14 = int_to_ptr.hbm [resolvable:$true] %s1664_s14 }
  0x11   :  { %214 = vmatpush.msra.mxu2 %v76_v6  ;;  %255 = vmatpush.msra.mxu3 %v77_v7  ;;  %v2163_v9 = vld [vmem:[#allocation5 + $0x1e0] sm:$0xff]  ;;  %v2175_v13 = vld [vmem:[#allocation5 + $0x1c8] sm:$0xff]  ;;  %v2179_v14 = vld [vmem:[#allocation5 + $0x1d8] sm:$0xff]  ;;  %s2083_s6 = smov 128   ;;  %s2084_s7 = smov 8  }
  0x12   :  { %1691 = vmatmul.msk.f32.vlgmr.msra.gmra.mxu0 %vm92_vm0, %v66_v8  ;;  %1699 = vmatmul.msk.f32.vlgmr.msra.gmra.mxu1 %vm92_vm0, %v66_v8  ;;  %v2173_v12 = vld [vmem:[#allocation5 + $0x1c0] sm:$0xff]  ;;  %v2181_v15 = vld [vmem:[#allocation5 + $0x1f0] sm:$0xff]  ;;  %v2186_v17 = vld [vmem:[#allocation5 + $0x1a8] sm:$0xff] }
  0x13   :  { %1707 = vmatmul.msk.f32.vlgmr.msra.gmra.mxu2 %vm92_vm0, %v66_v8  ;;  %1715 = vmatmul.msk.f32.vlgmr.msra.gmra.mxu3 %vm92_vm0, %v66_v8  ;;  %v2184_v16 = vld [vmem:[#allocation5 + $0x1a0] sm:$0xff]  ;;  %v2189_v18 = vld [vmem:[#allocation5 + $0x1d0] sm:$0xff]  ;;  %v2193_v19 = vld [vmem:[#allocation5 + $0x1b8] sm:$0xff] }
  0x14   :  { %386 = vmatpush.msrb.mxu0 %v2163_v9  ;;  %406 = vmatpush.msrb.mxu1 %v2165_v10  ;;  %v67_v20 = vld [vmem:[%s3127_s0 + $0x8] sm:$0xff]  ;;  %v2200_v21 = vld [vmem:[#allocation5 + $0x1b0] sm:$0xff]  ;;  %v2204_v22 = vld [vmem:[#allocation5 + $0x180] sm:$0xff] }
  0x15   :  { %446 = vmatpush.msrb.mxu3 %v2169_v11  ;;  %426 = vmatpush.msrb.mxu2 %v2181_v15  ;;  %v2206_v23 = vld [vmem:[#allocation5 + $0x188] sm:$0xff]  ;;  %v2212_v24 = vld [vmem:[#allocation5 + $0x198] sm:$0xff]  ;;  %v2214_v25 = vld [vmem:[#allocation5 + $0x190] sm:$0xff] }
  0x16   :  { %387 = vmatpush.msrb.mxu0 %v2173_v12  ;;  %407 = vmatpush.msrb.mxu1 %v2175_v13  ;;  %v2218_v26 = vld [vmem:[#allocation5 + $0x160] sm:$0xff]  ;;  %v2220_v27 = vld [vmem:[#allocation5 + $0x168] sm:$0xff]  ;;  %v2224_v28 = vld [vmem:[#allocation5 + $0x178] sm:$0xff] }
  0x17   :  { %447 = vmatpush.msrb.mxu3 %v2179_v14  ;;  %427 = vmatpush.msrb.mxu2 %v2189_v18  ;;  %v2226_v29 = vld [vmem:[#allocation5 + $0x170] sm:$0xff]  ;;  %v2229_v30 = vld [vmem:[#allocation5 + $0x140] sm:$0xff]  ;;  %v2231_v31 = vld [vmem:[#allocation5 + $0x148] sm:$0xff] }
  0x18   :  { %388 = vmatpush.msrb.mxu0 %v2184_v16  ;;  %408 = vmatpush.msrb.mxu1 %v2186_v17  ;;  %v2236_v32 = vld [vmem:[#allocation5 + $0x158] sm:$0xff]  ;;  %v2238_v33 = vld [vmem:[#allocation5 + $0x150] sm:$0xff]  ;;  %v2247_v35 = vld [vmem:[#allocation5 + $0x120] sm:$0xff] }
  0x19   :  { %448 = vmatpush.msrb.mxu3 %v2193_v19  ;;  %428 = vmatpush.msrb.mxu2 %v2200_v21  ;;  %v68_v34 = vld [vmem:[%s3127_s0 + $0x10] sm:$0xff]  ;;  %v2249_v36 = vld [vmem:[#allocation5 + $0x128] sm:$0xff]  ;;  %v2255_v37 = vld [vmem:[#allocation5 + $0x138] sm:$0xff] }
  0x1a   :  { %1692 = vmatmul.msk.f32.gmra.mxu0 %vm92_vm0, %v67_v20  ;;  %1700 = vmatmul.msk.f32.gmra.mxu1 %vm92_vm0, %v67_v20  ;;  %v2257_v38 = vld [vmem:[#allocation5 + $0x130] sm:$0xff]  ;;  %v2261_v39 = vld [vmem:[#allocation5 + $0x100] sm:$0xff]  ;;  %v2263_v40 = vld [vmem:[#allocation5 + $0x108] sm:$0xff] }
  0x1b   :  { %1708 = vmatmul.msk.f32.gmra.mxu2 %vm92_vm0, %v67_v20  ;;  %1716 = vmatmul.msk.f32.gmra.mxu3 %vm92_vm0, %v67_v20  ;;  %v2267_v41 = vld [vmem:[#allocation5 + $0x118] sm:$0xff]  ;;  %v2269_v42 = vld [vmem:[#allocation5 + $0x110] sm:$0xff]  ;;  %v2272_v43 = vld [vmem:[#allocation5 + $0xe0] sm:$0xff] }
  0x1c   :  { %389 = vmatpush.msrb.mxu0 %v2204_v22  ;;  %409 = vmatpush.msrb.mxu1 %v2206_v23  ;;  %v2274_v44 = vld [vmem:[#allocation5 + $0xe8] sm:$0xff]  ;;  %v2279_v45 = vld [vmem:[#allocation5 + $0xf8] sm:$0xff]  ;;  %v2281_v46 = vld [vmem:[#allocation5 + $0xf0] sm:$0xff] }
  0x1d   :  { %449 = vmatpush.msrb.mxu3 %v2212_v24  ;;  %429 = vmatpush.msrb.mxu2 %v2214_v25  ;;  %v69_v47 = vld [vmem:[%s3127_s0 + $0x18] sm:$0xff]  ;;  %v2290_v48 = vld [vmem:[#allocation5 + $0xc0] sm:$0xff]  ;;  %v2292_v49 = vld [vmem:[#allocation5 + $0xc8] sm:$0xff] }
  0x1e   :  { %390 = vmatpush.msrb.mxu0 %v2218_v26  ;;  %410 = vmatpush.msrb.mxu1 %v2220_v27  ;;  %v2298_v50 = vld [vmem:[#allocation5 + $0xd8] sm:$0xff]  ;;  %v2300_v51 = vld [vmem:[#allocation5 + $0xd0] sm:$0xff]  ;;  %v2304_v52 = vld [vmem:[#allocation5 + $0xa0] sm:$0xff] }
  0x1f   :  { %450 = vmatpush.msrb.mxu3 %v2224_v28  ;;  %430 = vmatpush.msrb.mxu2 %v2226_v29  ;;  %3221 = vst [vmem:[#allocation18_spill] sm:$0xff] %v2298_v50  ;;  %v2306_v53 = vld [vmem:[#allocation5 + $0xa8] sm:$0xff]  ;;  %v2310_v54 = vld [vmem:[#allocation5 + $0xb8] sm:$0xff]  ;;  %v2312_v55 = vld [vmem:[#allocation5 + $0xb0] sm:$0xff] }
  0x20   :  { %391 = vmatpush.msrb.mxu0 %v2229_v30  ;;  %411 = vmatpush.msrb.mxu1 %v2231_v31  ;;  %3222 = vst [vmem:[#allocation19_spill] sm:$0xff] %v2304_v52  ;;  %v2315_v56 = vld [vmem:[#allocation5 + $0x80] sm:$0xff]  ;;  %v2317_v57 = vld [vmem:[#allocation5 + $0x88] sm:$0xff]  ;;  %v2322_v58 = vld [vmem:[#allocation5 + $0x98] sm:$0xff] }
  0x21   :  { %451 = vmatpush.msrb.mxu3 %v2236_v32  ;;  %431 = vmatpush.msrb.mxu2 %v2238_v33  ;;  %3223 = vst [vmem:[#allocation20_spill] sm:$0xff] %v2306_v53  ;;  %v2324_v59 = vld [vmem:[#allocation5 + $0x90] sm:$0xff]  ;;  %v70_v60 = vld [vmem:[%s3127_s0 + $0x20] sm:$0xff]  ;;  %v2335_v62 = vld [vmem:[#allocation5 + $0x68] sm:$0xff] }
  0x22   :  { %1693 = vmatmul.msk.f32.gmra.mxu0 %vm92_vm0, %v68_v34  ;;  %1701 = vmatmul.msk.f32.gmra.mxu1 %vm92_vm0, %v68_v34  ;;  %3224 = vst [vmem:[#allocation21_spill] sm:$0xff] %v2310_v54  ;;  %v2333_v61 = vld [vmem:[#allocation5 + $0x60] sm:$0xff]  ;;  %v2341_v63 = vld [vmem:[#allocation5 + $0x78] sm:$0xff]  ;;  %v2343_v0 = vld [vmem:[#allocation5 + $0x70] sm:$0xff] }
  0x23   :  { %1709 = vmatmul.msk.f32.gmra.mxu2 %vm92_vm0, %v68_v34  ;;  %1717 = vmatmul.msk.f32.gmra.mxu3 %vm92_vm0, %v68_v34  ;;  %3225 = vst [vmem:[#allocation22_spill] sm:$0xff] %v2312_v55  ;;  %v2347_v1 = vld [vmem:[#allocation5 + $0x40] sm:$0xff]  ;;  %v2349_v2 = vld [vmem:[#allocation5 + $0x48] sm:$0xff]  ;;  %v2353_v3 = vld [vmem:[#allocation5 + $0x58] sm:$0xff] }
  0x24   :  { %392 = vmatpush.msrb.mxu0 %v2247_v35  ;;  %412 = vmatpush.msrb.mxu1 %v2249_v36  ;;  %3226 = vst [vmem:[#allocation23_spill] sm:$0xff] %v2315_v56  ;;  %v2355_v4 = vld [vmem:[#allocation5 + $0x50] sm:$0xff]  ;;  %v2358_v5 = vld [vmem:[#allocation5 + $0x20] sm:$0xff]  ;;  %v2360_v6 = vld [vmem:[#allocation5 + $0x28] sm:$0xff] }
  0x25   :  { %452 = vmatpush.msrb.mxu3 %v2255_v37  ;;  %432 = vmatpush.msrb.mxu2 %v2257_v38  ;;  %3227 = vst [vmem:[#allocation24_spill] sm:$0xff] %v2317_v57  ;;  %v2365_v7 = vld [vmem:[#allocation5 + $0x30] sm:$0xff]  ;;  %v2367_v8 = vld [vmem:[#allocation5 + $0x38] sm:$0xff]  ;;  %v71_v20 = vld [vmem:[%s3127_s0 + $0x28] sm:$0xff] }
  0x26   :  { %393 = vmatpush.msrb.mxu0 %v2261_v39  ;;  %413 = vmatpush.msrb.mxu1 %v2263_v40  ;;  %3228 = vst [vmem:[#allocation25_spill] sm:$0xff] %v2322_v58  ;;  %v2376_v34 = vld [vmem:[#allocation5] sm:$0xff] }
  0x27   :  { %453 = vmatpush.msrb.mxu3 %v2267_v41  ;;  %433 = vmatpush.msrb.mxu2 %v2269_v42  ;;  %3229 = vst [vmem:[#allocation26_spill] sm:$0xff] %v2324_v59 }
  0x28   :  { %394 = vmatpush.msrb.mxu0 %v2272_v43  ;;  %414 = vmatpush.msrb.mxu1 %v2274_v44  ;;  %3230 = vst [vmem:[#allocation27_spill] sm:$0xff] %v2333_v61 }
  0x29   :  { %454 = vmatpush.msrb.mxu3 %v2279_v45  ;;  %434 = vmatpush.msrb.mxu2 %v2281_v46  ;;  %3231 = vst [vmem:[#allocation28_spill] sm:$0xff] %v2335_v62 }
  0x2a   :  { %1694 = vmatmul.msk.f32.gmra.mxu0 %vm92_vm0, %v69_v47  ;;  %1702 = vmatmul.msk.f32.gmra.mxu1 %vm92_vm0, %v69_v47  ;;  %3232 = vst [vmem:[#allocation29_spill] sm:$0xff] %v2341_v63 }
  0x2b   :  { %1710 = vmatmul.msk.f32.gmra.mxu2 %vm92_vm0, %v69_v47  ;;  %1718 = vmatmul.msk.f32.gmra.mxu3 %vm92_vm0, %v69_v47  ;;  %3233 = vst [vmem:[#allocation30_spill] sm:$0xff] %v2343_v0  ;;  %v2378_v47 = vld [vmem:[#allocation5 + $0x8] sm:$0xff] }
  0x2c   :  { %395 = vmatpush.msrb.mxu0 %v2290_v48  ;;  %415 = vmatpush.msrb.mxu1 %v2292_v49  ;;  %3234 = vst [vmem:[#allocation31_spill] sm:$0xff] %v2347_v1 }
  0x2d   :  { %455 = vmatpush.msrb.mxu3 %v2298_v50  ;;  %435 = vmatpush.msrb.mxu2 %v2300_v51  ;;  %3235 = vst [vmem:[#allocation32_spill] sm:$0xff] %v2349_v2 }
  0x2e   :  { %396 = vmatpush.msrb.mxu0 %v2304_v52  ;;  %416 = vmatpush.msrb.mxu1 %v2306_v53  ;;  %3236 = vst [vmem:[#allocation33_spill] sm:$0xff] %v2353_v3 }
  0x2f   :  { %456 = vmatpush.msrb.mxu3 %v2310_v54  ;;  %436 = vmatpush.msrb.mxu2 %v2312_v55  ;;  %3237 = vst [vmem:[#allocation34_spill] sm:$0xff] %v2355_v4 }
  0x30   :  { %397 = vmatpush.msrb.mxu0 %v2315_v56  ;;  %417 = vmatpush.msrb.mxu1 %v2317_v57  ;;  %3238 = vst [vmem:[#allocation35_spill] sm:$0xff] %v2358_v5 }
  0x31   :  { %457 = vmatpush.msrb.mxu3 %v2322_v58  ;;  %437 = vmatpush.msrb.mxu2 %v2324_v59  ;;  %3239 = vst [vmem:[#allocation36_spill] sm:$0xff] %v2360_v6 }
  0x32   :  { %1695 = vmatmul.msk.f32.gmra.mxu0 %vm92_vm0, %v70_v60  ;;  %1703 = vmatmul.msk.f32.gmra.mxu1 %vm92_vm0, %v70_v60  ;;  %3240 = vst [vmem:[#allocation37_spill] sm:$0xff] %v2365_v7 }
  0x33   :  { %1711 = vmatmul.msk.f32.gmra.mxu2 %vm92_vm0, %v70_v60  ;;  %1719 = vmatmul.msk.f32.gmra.mxu3 %vm92_vm0, %v70_v60  ;;  %3241 = vst [vmem:[#allocation38_spill] sm:$0xff] %v2367_v8  ;;  %v2384_v60 = vld [vmem:[#allocation5 + $0x10] sm:$0xff] }
  0x34   :  { %398 = vmatpush.msrb.mxu0 %v2333_v61  ;;  %418 = vmatpush.msrb.mxu1 %v2335_v62  ;;  %3242 = vst [vmem:[#allocation39_spill] sm:$0xff] %v2376_v34 }
  0x35   :  { %458 = vmatpush.msrb.mxu3 %v2341_v63  ;;  %438 = vmatpush.msrb.mxu2 %v2343_v0  ;;  %3243 = vst [vmem:[#allocation40_spill] sm:$0xff] %v2378_v47 }
  0x36   :  { %399 = vmatpush.msrb.mxu0 %v2347_v1  ;;  %419 = vmatpush.msrb.mxu1 %v2349_v2  ;;  %3244 = vst [vmem:[#allocation41_spill] sm:$0xff] %v2384_v60 }
  0x37   :  { %459 = vmatpush.msrb.mxu3 %v2353_v3  ;;  %439 = vmatpush.msrb.mxu2 %v2355_v4  ;;  %v2386_v3 = vld [vmem:[#allocation5 + $0x18] sm:$0xff] }
  0x38   :  { %400 = vmatpush.msrb.mxu0 %v2358_v5  ;;  %420 = vmatpush.msrb.mxu1 %v2360_v6  ;;  %3245 = vst [vmem:[#allocation42_spill] sm:$0xff] %v2386_v3 }
  0x39   :  { %440 = vmatpush.msrb.mxu2 %v2365_v7  ;;  %460 = vmatpush.msrb.mxu3 %v2367_v8  ;;  %v72_v8 = vld [vmem:[%s3127_s0 + $0x30] sm:$0xff] }
  0x3a   :  { %1696 = vmatmul.msk.f32.gmra.mxu0 %vm92_vm0, %v71_v20  ;;  %1704 = vmatmul.msk.f32.gmra.mxu1 %vm92_vm0, %v71_v20 }
  0x3b   :  { %1712 = vmatmul.msk.f32.gmra.mxu2 %vm92_vm0, %v71_v20  ;;  %1720 = vmatmul.msk.f32.gmra.mxu3 %vm92_vm0, %v71_v20  ;;  %v73_v20 = vld [vmem:[%s3127_s0 + $0x38] sm:$0xff] }
  0x3c   :  { %401 = vmatpush.msrb.mxu0 %v2376_v34  ;;  %421 = vmatpush.msrb.mxu1 %v2378_v47 }
  0x3d   :  { %441 = vmatpush.msrb.mxu2 %v2384_v60  ;;  %461 = vmatpush.msrb.mxu3 %v2386_v3 }
  0x3e   :  { %541 = vmatpush.msra.mxu0 %v2163_v9  ;;  %561 = vmatpush.msra.mxu1 %v2165_v10 }
  0x3f   :  { %581 = vmatpush.msra.mxu2 %v2181_v15  ;;  %601 = vmatpush.msra.mxu3 %v2169_v11 }
  0x40   :  { %542 = vmatpush.msra.mxu0 %v2173_v12  ;;  %562 = vmatpush.msra.mxu1 %v2175_v13 }
  0x41   :  { %582 = vmatpush.msra.mxu2 %v2189_v18  ;;  %602 = vmatpush.msra.mxu3 %v2179_v14 }
  0x42   :  { %1697 = vmatmul.msk.f32.gmra.mxu0 %vm92_vm0, %v72_v8  ;;  %1705 = vmatmul.msk.f32.gmra.mxu1 %vm92_vm0, %v72_v8 }
  0x43   :  { %1713 = vmatmul.msk.f32.gmra.mxu2 %vm92_vm0, %v72_v8  ;;  %1721 = vmatmul.msk.f32.gmra.mxu3 %vm92_vm0, %v72_v8  ;;  %v62_v8 = vld [vmem:[%s3131_s4] sm:$0xff] }
  0x44   :  { %543 = vmatpush.msra.mxu0 %v2184_v16  ;;  %563 = vmatpush.msra.mxu1 %v2186_v17 }
  0x45   :  { %583 = vmatpush.msra.mxu2 %v2200_v21  ;;  %603 = vmatpush.msra.mxu3 %v2193_v19 }
  0x46   :  { %544 = vmatpush.msra.mxu0 %v2204_v22  ;;  %564 = vmatpush.msra.mxu1 %v2206_v23 }
  0x47   :  { %584 = vmatpush.msra.mxu2 %v2214_v25  ;;  %604 = vmatpush.msra.mxu3 %v2212_v24 }
  0x48   :  { %545 = vmatpush.msra.mxu0 %v2218_v26  ;;  %565 = vmatpush.msra.mxu1 %v2220_v27 }
  0x49   :  { %585 = vmatpush.msra.mxu2 %v2226_v29  ;;  %605 = vmatpush.msra.mxu3 %v2224_v28 }
  0x4a   :  { %1698 = vmatmul.msk.f32.gmra.mxu0 %vm92_vm0, %v73_v20  ;;  %1706 = vmatmul.msk.f32.gmra.mxu1 %vm92_vm0, %v73_v20 }
  0x4b   :  { %1714 = vmatmul.msk.f32.gmra.mxu2 %vm92_vm0, %v73_v20  ;;  %1722 = vmatmul.msk.f32.gmra.mxu3 %vm92_vm0, %v73_v20  ;;  %v3246_v20 = vld [vmem:[#allocation33_spill] sm:$0xff] }
  0x4c   :  { %546 = vmatpush.msra.mxu0 %v2229_v30  ;;  %566 = vmatpush.msra.mxu1 %v2231_v31 }
  0x4d   :  { %586 = vmatpush.msra.mxu2 %v2238_v33  ;;  %606 = vmatpush.msra.mxu3 %v2236_v32 }
  0x4e   :  { %547 = vmatpush.msra.mxu0 %v2247_v35  ;;  %567 = vmatpush.msra.mxu1 %v2249_v36 }
  0x4f   :  { %587 = vmatpush.msra.mxu2 %v2257_v38  ;;  %607 = vmatpush.msra.mxu3 %v2255_v37 }
  0x50   :  { %548 = vmatpush.msra.mxu0 %v2261_v39  ;;  %568 = vmatpush.msra.mxu1 %v2263_v40 }
  0x51   :  { %588 = vmatpush.msra.mxu2 %v2269_v42  ;;  %608 = vmatpush.msra.mxu3 %v2267_v41 }
  0x52   :  { %402 = vmatmul.f32.vlgmr.msrb.gmra.mxu0 %v62_v8  ;;  %422 = vmatmul.f32.vlgmr.msrb.gmra.mxu1 %v62_v8 }
  0x53   :  { %442 = vmatmul.f32.vlgmr.msrb.gmra.mxu2 %v62_v8  ;;  %462 = vmatmul.f32.vlgmr.msrb.gmra.mxu3 %v62_v8  ;;  %v3247_v8 = vld [vmem:[#allocation38_spill] sm:$0xff] }
  0x54   :  { %549 = vmatpush.msra.mxu0 %v2272_v43  ;;  %569 = vmatpush.msra.mxu1 %v2274_v44 }
  0x55   :  { %589 = vmatpush.msra.mxu2 %v2281_v46  ;;  %609 = vmatpush.msra.mxu3 %v2279_v45 }
  0x56   :  { %550 = vmatpush.msra.mxu0 %v2290_v48  ;;  %570 = vmatpush.msra.mxu1 %v2292_v49 }
  0x57   :  { %590 = vmatpush.msra.mxu2 %v2300_v51  ;;  %610 = vmatpush.msra.mxu3 %v2298_v50 }
  0x58   :  { %551 = vmatpush.msra.mxu0 %v2304_v52  ;;  %571 = vmatpush.msra.mxu1 %v2306_v53 }
  0x59   :  { %591 = vmatpush.msra.mxu2 %v2312_v55  ;;  %611 = vmatpush.msra.mxu3 %v2310_v54 }
  0x5a   :  { %552 = vmatpush.msra.mxu0 %v2315_v56  ;;  %572 = vmatpush.msra.mxu1 %v2317_v57 }
  0x5b   :  { %592 = vmatpush.msra.mxu2 %v2324_v59  ;;  %612 = vmatpush.msra.mxu3 %v2322_v58 }
  0x5c   :  { %553 = vmatpush.msra.mxu0 %v2333_v61  ;;  %573 = vmatpush.msra.mxu1 %v2335_v62 }
  0x5d   :  { %593 = vmatpush.msra.mxu2 %v2343_v0  ;;  %613 = vmatpush.msra.mxu3 %v2341_v63 }
  0x5e   :  { %554 = vmatpush.msra.mxu0 %v2347_v1  ;;  %574 = vmatpush.msra.mxu1 %v2349_v2 }
  0x5f   :  { %594 = vmatpush.msra.mxu2 %v2355_v4  ;;  %614 = vmatpush.msra.mxu3 %v3246_v20 }
  0x60   :  { %555 = vmatpush.msra.mxu0 %v2358_v5  ;;  %575 = vmatpush.msra.mxu1 %v2360_v6 }
  0x61   :  { %595 = vmatpush.msra.mxu2 %v2365_v7  ;;  %615 = vmatpush.msra.mxu3 %v3247_v8 }
  0x62   :  { %556 = vmatpush.msra.mxu0 %v2376_v34  ;;  %576 = vmatpush.msra.mxu1 %v2378_v47 }
  0x63   :  { %596 = vmatpush.msra.mxu2 %v2384_v60  ;;  %616 = vmatpush.msra.mxu3 %v2386_v3 }
  0x64   :  { %697 = vmatpush.msrb.mxu0 %v2163_v9  ;;  %717 = vmatpush.msrb.mxu1 %v2165_v10 }
  0x65   :  { %737 = vmatpush.msrb.mxu2 %v2181_v15  ;;  %757 = vmatpush.msrb.mxu3 %v2169_v11 }
  0x66   :  { %698 = vmatpush.msrb.mxu0 %v2173_v12  ;;  %718 = vmatpush.msrb.mxu1 %v2175_v13 }
  0x67   :  { %738 = vmatpush.msrb.mxu2 %v2189_v18  ;;  %758 = vmatpush.msrb.mxu3 %v2179_v14 }
  0x68   :  { %699 = vmatpush.msrb.mxu0 %v2184_v16  ;;  %719 = vmatpush.msrb.mxu1 %v2186_v17 }
  0x69   :  { %739 = vmatpush.msrb.mxu2 %v2200_v21  ;;  %759 = vmatpush.msrb.mxu3 %v2193_v19 }
  0x6a   :  { %700 = vmatpush.msrb.mxu0 %v2204_v22  ;;  %720 = vmatpush.msrb.mxu1 %v2206_v23 }
  0x6b   :  { %740 = vmatpush.msrb.mxu2 %v2214_v25  ;;  %760 = vmatpush.msrb.mxu3 %v2212_v24 }
  0x6c   :  { %701 = vmatpush.msrb.mxu0 %v2218_v26  ;;  %721 = vmatpush.msrb.mxu1 %v2220_v27 }
  0x6d   :  { %741 = vmatpush.msrb.mxu2 %v2226_v29  ;;  %761 = vmatpush.msrb.mxu3 %v2224_v28 }
  0x6e   :  { %702 = vmatpush.msrb.mxu0 %v2229_v30  ;;  %722 = vmatpush.msrb.mxu1 %v2231_v31 }
  0x6f   :  { %742 = vmatpush.msrb.mxu2 %v2238_v33  ;;  %762 = vmatpush.msrb.mxu3 %v2236_v32 }
  0x70   :  { %703 = vmatpush.msrb.mxu0 %v2247_v35  ;;  %723 = vmatpush.msrb.mxu1 %v2249_v36 }
  0x71   :  { %743 = vmatpush.msrb.mxu2 %v2257_v38  ;;  %763 = vmatpush.msrb.mxu3 %v2255_v37 }
  0x72   :  { %704 = vmatpush.msrb.mxu0 %v2261_v39  ;;  %724 = vmatpush.msrb.mxu1 %v2263_v40 }
  0x73   :  { %744 = vmatpush.msrb.mxu2 %v2269_v42  ;;  %764 = vmatpush.msrb.mxu3 %v2267_v41 }
  0x74   :  { %705 = vmatpush.msrb.mxu0 %v2272_v43  ;;  %725 = vmatpush.msrb.mxu1 %v2274_v44 }
  0x75   :  { %745 = vmatpush.msrb.mxu2 %v2281_v46  ;;  %765 = vmatpush.msrb.mxu3 %v2279_v45 }
  0x76   :  { %706 = vmatpush.msrb.mxu0 %v2290_v48  ;;  %726 = vmatpush.msrb.mxu1 %v2292_v49 }
  0x77   :  { %746 = vmatpush.msrb.mxu2 %v2300_v51  ;;  %766 = vmatpush.msrb.mxu3 %v2298_v50 }
  0x78   :  { %707 = vmatpush.msrb.mxu0 %v2304_v52  ;;  %727 = vmatpush.msrb.mxu1 %v2306_v53 }
  0x79   :  { %747 = vmatpush.msrb.mxu2 %v2312_v55  ;;  %767 = vmatpush.msrb.mxu3 %v2310_v54 }
  0x7a   :  { %708 = vmatpush.msrb.mxu0 %v2315_v56  ;;  %728 = vmatpush.msrb.mxu1 %v2317_v57 }
  0x7b   :  { %748 = vmatpush.msrb.mxu2 %v2324_v59  ;;  %768 = vmatpush.msrb.mxu3 %v2322_v58 }
  0x7c   :  { %709 = vmatpush.msrb.mxu0 %v2333_v61  ;;  %729 = vmatpush.msrb.mxu1 %v2335_v62 }
  0x7d   :  { %749 = vmatpush.msrb.mxu2 %v2343_v0  ;;  %769 = vmatpush.msrb.mxu3 %v2341_v63 }
  0x7e   :  { %710 = vmatpush.msrb.mxu0 %v2347_v1  ;;  %730 = vmatpush.msrb.mxu1 %v2349_v2  ;;  %v82_v1 = vld [vmem:[#allocation8] sm:$0xf] }
  0x7f   :  { %750 = vmatpush.msrb.mxu2 %v2355_v4  ;;  %770 = vmatpush.msrb.mxu3 %v3246_v20  ;;  %v84_v20 = vperm.slane %v82_v1, 0  ;;  %v85_v63 = vperm.slane %v82_v1, 1 }
  0x80   :  { %711 = vmatpush.msrb.mxu0 %v2358_v5  ;;  %731 = vmatpush.msrb.mxu1 %v2360_v6 }
  0x81   :  { %751 = vmatpush.msrb.mxu2 %v2365_v7  ;;  %771 = vmatpush.msrb.mxu3 %v3247_v8 }
  0x82   :  { %712 = vmatpush.msrb.mxu0 %v2376_v34  ;;  %732 = vmatpush.msrb.mxu1 %v2378_v47  ;;  %v2547_v47 = vperm.slane %v82_v1, 2 }
  0x83   :  { %752 = vmatpush.msrb.mxu2 %v2384_v60  ;;  %772 = vmatpush.msrb.mxu3 %v2386_v3  ;;  %v87_v60 = vperm.slane %v82_v1, 3 }
  0x8f   :  { %v134_v2 = vpop.f32.mrf.mxu0  ;;  %v175_v4 = vpop.f32.mrf.mxu1 }
  0x96   :  { %v2539_v5 = vpop.f32.mrf.mxu2  ;;  %v2541_v6 = vpop.f32.mrf.mxu3 }
  0x97   :  { %v137_v7 = vpop.f32.mrf.mxu0  ;;  %v178_v0 = vpop.f32.mrf.mxu1 }
  0x98   :  { %v2543_v8 = vadd.f32 %v137_v7, %v84_v20  ;;  %v2545_v34 = vadd.f32 %v178_v0, %v85_v63 }
  0x9a   :  { %3248 = vst [vmem:[#allocation43_spill] sm:$0xff] %v2543_v8 }
  0x9b   :  { %3249 = vst [vmem:[#allocation44_spill] sm:$0xff] %v2545_v34 }
  0x9e   :  { %v219_v62 = vpop.f32.mrf.mxu2  ;;  %v260_v3 = vpop.f32.mrf.mxu3 }
  0x9f   :  { %v2550_v61 = vadd.f32 %v219_v62, %v2547_v47  ;;  %v2552_v58 = vadd.f32 %v260_v3, %v87_v60  ;;  %v140_v59 = vpop.f32.mrf.mxu0  ;;  %v181_v57 = vpop.f32.mrf.mxu1 }
  0xa0   :  { %v2554_v56 = vadd.f32 %v140_v59, %v84_v20  ;;  %v2556_v54 = vadd.f32 %v181_v57, %v85_v63 }
  0xa1   :  { %3250 = vst [vmem:[#allocation45_spill] sm:$0xff] %v2550_v61 }
  0xa2   :  { %3251 = vst [vmem:[#allocation46_spill] sm:$0xff] %v2552_v58 }
  0xa3   :  { %3252 = vst [vmem:[#allocation47_spill] sm:$0xff] %v2554_v56 }
  0xa4   :  { %3253 = vst [vmem:[#allocation48_spill] sm:$0xff] %v2556_v54 }
  0xa6   :  { %v222_v7 = vpop.f32.mrf.mxu2  ;;  %v263_v8 = vpop.f32.mrf.mxu3 }
  0xa7   :  { %v2559_v0 = vadd.f32 %v222_v7, %v2547_v47  ;;  %v2561_v34 = vadd.f32 %v263_v8, %v87_v60  ;;  %v143_v1 = vpop.f32.mrf.mxu0  ;;  %v184_v55 = vpop.f32.mrf.mxu1 }
  0xa8   :  { %v2563_v53 = vadd.f32 %v143_v1, %v84_v20  ;;  %v2565_v62 = vadd.f32 %v184_v55, %v85_v63 }
  0xa9   :  { %3254 = vst [vmem:[#allocation49_spill] sm:$0xff] %v2559_v0 }
  0xaa   :  { %3255 = vst [vmem:[#allocation50_spill] sm:$0xff] %v2561_v34 }
  0xab   :  { %3256 = vst [vmem:[#allocation51_spill] sm:$0xff] %v2563_v53 }
  0xac   :  { %3257 = vst [vmem:[#allocation52_spill] sm:$0xff] %v2565_v62 }
  0xae   :  { %v225_v3 = vpop.f32.mrf.mxu2  ;;  %v266_v61 = vpop.f32.mrf.mxu3 }
  0xaf   :  { %v2568_v59 = vadd.f32 %v225_v3, %v2547_v47  ;;  %v2570_v57 = vadd.f32 %v266_v61, %v87_v60  ;;  %v146_v54 = vpop.f32.mrf.mxu0  ;;  %v187_v56 = vpop.f32.mrf.mxu1 }
  0xb0   :  { %v2572_v58 = vadd.f32 %v146_v54, %v84_v20  ;;  %v2574_v7 = vadd.f32 %v187_v56, %v85_v63 }
  0xb1   :  { %3258 = vst [vmem:[#allocation53_spill] sm:$0xff] %v2568_v59 }
  0xb2   :  { %3259 = vst [vmem:[#allocation54_spill] sm:$0xff] %v2570_v57 }
  0xb3   :  { %3260 = vst [vmem:[#allocation55_spill] sm:$0xff] %v2572_v58 }
  0xb4   :  { %3261 = vst [vmem:[#allocation56_spill] sm:$0xff] %v2574_v7 }
  0xb6   :  { %v228_v8 = vpop.f32.mrf.mxu2  ;;  %v269_v0 = vpop.f32.mrf.mxu3 }
  0xb7   :  { %v2577_v1 = vadd.f32 %v228_v8, %v2547_v47  ;;  %v2579_v55 = vadd.f32 %v269_v0, %v87_v60  ;;  %v149_v62 = vpop.f32.mrf.mxu0  ;;  %v190_v53 = vpop.f32.mrf.mxu1 }
  0xb8   :  { %v2581_v34 = vadd.f32 %v149_v62, %v84_v20  ;;  %v2583_v3 = vadd.f32 %v190_v53, %v85_v63 }
  0xb9   :  { %3262 = vst [vmem:[#allocation57_spill] sm:$0xff] %v2577_v1 }
  0xba   :  { %3263 = vst [vmem:[#allocation58_spill] sm:$0xff] %v2579_v55 }
  0xbb   :  { %3264 = vst [vmem:[#allocation59_spill] sm:$0xff] %v2581_v34 }
  0xbc   :  { %3265 = vst [vmem:[#allocation60_spill] sm:$0xff] %v2583_v3 }
  0xbe   :  { %v231_v61 = vpop.f32.mrf.mxu2  ;;  %v272_v59 = vpop.f32.mrf.mxu3 }
  0xbf   :  { %v2586_v54 = vadd.f32 %v231_v61, %v2547_v47  ;;  %v2588_v56 = vadd.f32 %v272_v59, %v87_v60  ;;  %v152_v7 = vpop.f32.mrf.mxu0  ;;  %v193_v58 = vpop.f32.mrf.mxu1  ;;  %v135_v59 = vadd.f32 %v134_v2, %v84_v20 }
  0xc0   :  { %v2590_v57 = vadd.f32 %v152_v7, %v84_v20  ;;  %v2592_v8 = vadd.f32 %v193_v58, %v85_v63 }
  0xc1   :  { %3266 = vst [vmem:[#allocation61_spill] sm:$0xff] %v2586_v54  ;;  %v176_v54 = vadd.f32 %v175_v4, %v85_v63 }
  0xc2   :  { %3267 = vst [vmem:[#allocation62_spill] sm:$0xff] %v2588_v56 }
  0xc3   :  { %3268 = vst [vmem:[#allocation63_spill] sm:$0xff] %v2590_v57 }
  0xc4   :  { %3269 = vst [vmem:[#allocation64_spill] sm:$0xff] %v2592_v8 }
  0xc6   :  { %v234_v0 = vpop.f32.mrf.mxu2  ;;  %v275_v1 = vpop.f32.mrf.mxu3 }
  0xc7   :  { %v2595_v62 = vadd.f32 %v234_v0, %v2547_v47  ;;  %v2597_v53 = vadd.f32 %v275_v1, %v87_v60  ;;  %v155_v3 = vpop.f32.mrf.mxu0  ;;  %v196_v34 = vpop.f32.mrf.mxu1 }
  0xc8   :  { %v2599_v55 = vadd.f32 %v155_v3, %v84_v20  ;;  %v2601_v61 = vadd.f32 %v196_v34, %v85_v63  ;;  %v258_v3 = vadd.f32 %v2541_v6, %v87_v60 }
  0xc9   :  { %3270 = vst [vmem:[#allocation65_spill] sm:$0xff] %v2595_v62 }
  0xca   :  { %3271 = vst [vmem:[#allocation66_spill] sm:$0xff] %v2597_v53 }
  0xcb   :  { %3272 = vst [vmem:[#allocation67_spill] sm:$0xff] %v2599_v55 }
  0xcc   :  { %3273 = vst [vmem:[#allocation68_spill] sm:$0xff] %v2601_v61 }
  0xce   :  { %v237_v56 = vpop.f32.mrf.mxu2  ;;  %v278_v7 = vpop.f32.mrf.mxu3 }
  0xcf   :  { %v2604_v58 = vadd.f32 %v237_v56, %v2547_v47  ;;  %v2606_v8 = vadd.f32 %v278_v7, %v87_v60  ;;  %v403_v57 = vpop.f32.mrf.mxu0  ;;  %v423_v0 = vpop.f32.mrf.mxu1 }
  0xd0   :  { %v466_v62 = vadd.f32 %v403_v57, %v135_v59  ;;  %v467_v1 = vadd.f32 %v423_v0, %v176_v54  ;;  %v217_v57 = vadd.f32 %v2539_v5, %v2547_v47 }
  0xd1   :  { %3274 = vst [vmem:[#allocation69_spill] sm:$0xff] %v2604_v58 }
  0xd2   :  { %3275 = vst [vmem:[#allocation70_spill] sm:$0xff] %v2606_v8  ;;  %v1723_v53 = vmul.f32 -1.442695, %v466_v62  ;;  %v1724_v52 = vmul.f32 -1.442695, %v467_v1 }
  0xd4   :  { %1756 = vpow2.f32 %v1723_v53 }
  0xd5   :  { %1758 = vpow2.f32 %v1724_v52 }
  0xd6   :  { %v463_v34 = vpop.f32.mrf.mxu3  ;;  %v443_v7 = vpop.f32.mrf.mxu2 }
  0xd7   :  { %v469_v2 = vadd.f32 %v463_v34, %v258_v3  ;;  %v468_v53 = vadd.f32 %v443_v7, %v217_v57 }
  0xd9   :  { %v1725_v63 = vmul.f32 -1.442695, %v469_v2 }
  0xda   :  { %v1757_v4 = vpop.eup %1756 }
  0xdb   :  { %v1759_v20 = vpop.eup %1758  ;;  %v473_v61 = vadd.f32 1.0, %v1757_v4  ;;  %1760 = vpow2.f32 %v1725_v63 }
  0xdc   :  { %v492_v56 = vadd.f32 1.0, %v1759_v20 }
  0xdd   :  { %1762 = vrcp.f32 %v473_v61  ;;  %v485_v1 = vand.u32 2147483648, %v473_v61  ;;  %v483_v2 = vand.u32 2147483647, %v473_v61  ;;  %vm479_vm3 = vweird.f32 %v473_v61 }
  0xde   :  { %1764 = vrcp.f32 %v492_v56  ;;  %v504_v3 = vand.u32 2147483648, %v492_v56  ;;  %v502_v4 = vand.u32 2147483647, %v492_v56  ;;  %vm498_vm4 = vweird.f32 %v492_v56 }
  0xdf   :  { %v486_v47 = vor.u32 1.1754944e-38, %v485_v1  ;;  %vm484_vm7 = vcmp.eq.f32.partialorder %v483_v2, 8.507059e+37 }
  0xe0   :  { %v505_v57 = vor.u32 1.1754944e-38, %v504_v3  ;;  %vm503_vm8 = vcmp.eq.f32.partialorder %v502_v4, 8.507059e+37 }
  0xe1   :  { %v1761_v58 = vpop.eup %1760 }
  0xe2   :  { %v512_v54 = vadd.f32 1.0, %v1761_v58 }
  0xe3   :  { %v1763_v62 = vpop.eup %1762 }
  0xe4   :  { %v1765_v6 = vpop.eup %1764  ;;  %v475_v52 = vmul.f32 %v1763_v62, %v473_v61  ;;  %1766 = vrcp.f32 %v512_v54  ;;  %vm480_vm1 = vweird.f32 %v1763_v62  ;;  %v524_v3 = vand.u32 2147483648, %v512_v54 }
  0xe5   :  { %v494_v60 = vmul.f32 %v1765_v6, %v492_v56  ;;  %1768 = vtanh.f32 %v468_v53  ;;  %vm499_vm2 = vweird.f32 %v1765_v6  ;;  %vm481_vm5 = vmor %vm479_vm3, %vm480_vm1  ;;  %v64_v53 = vld [vmem:[%s3132_s5] sm:$0xff]  ;;  %vm518_vm10 = vweird.f32 %v512_v54  ;;  %s2080_s5 = smov [#allocation10]  }
  0xe6   :  { %v476_v59 = vsub.f32 1.0, %v475_v52  ;;  %vm500_vm6 = vmor %vm498_vm4, %vm499_vm2  ;;  %v522_v50 = vand.u32 2147483647, %v512_v54  ;;  %v525_v2 = vor.u32 1.1754944e-38, %v524_v3  ;;  %s1637_s24 = sshll.u32 %s2080_s5, 4  ;;  %s1638_s24 = int_to_ptr.vmem [resolvable:$true] %s1637_s24 }
  0xe7   :  { %v495_v0 = vsub.f32 1.0, %v494_v60 }
  0xe8   :  { %v477_v34 = vmul.f32 %v1763_v62, %v476_v59  ;;  %vm523_vm12 = vcmp.eq.f32.partialorder %v522_v50, 8.507059e+37 }
  0xe9   :  { %v496_v63 = vmul.f32 %v1765_v6, %v495_v0 }
  0xea   :  { %v1767_v20 = vpop.eup %1766  ;;  %v478_v5 = vadd.f32 %v1763_v62, %v477_v34 }
  0xeb   :  { %v497_v58 = vadd.f32 %v1765_v6, %v496_v63  ;;  %v514_v7 = vmul.f32 %v1767_v20, %v512_v54  ;;  %v1769_v60 = vpop.eup %1768  ;;  %vm519_vm9 = vweird.f32 %v1767_v20 }
  0xec   :  { %v482_v52 = vsel %vm481_vm5, %v1763_v62, %v478_v5  ;;  %vm520_vm11 = vmor %vm518_vm10, %vm519_vm9 }
  0xed   :  { %v487_v59 = vsel %vm484_vm7, %v486_v47, %v482_v52  ;;  %v501_v0 = vsel %vm500_vm6, %v1765_v6, %v497_v58  ;;  %v515_v8 = vsub.f32 1.0, %v514_v7  ;;  %v3304_v58 = vld [vmem:[#allocation45_spill] sm:$0xff] }
  0xee   :  { %v506_v34 = vsel %vm503_vm8, %v505_v57, %v501_v0  ;;  %v529_v61 = vmul.f32 %v1769_v60, %v487_v59 }
  0xef   :  { %v528_v56 = vmul.f32 %v506_v34, %v64_v53  ;;  %v516_v55 = vmul.f32 %v1767_v20, %v515_v8 }
  0xf1   :  { %v2614_v1 = vadd.f32 %v529_v61, %v528_v56  ;;  %v517_v63 = vadd.f32 %v1767_v20, %v516_v55 }
  0xf3   :  { %1770 = vtanh.f32 %v2614_v1  ;;  %v521_v62 = vsel %vm520_vm11, %v1767_v20, %v517_v63 }
  0xf4   :  { %v526_v4 = vsel %vm523_vm12, %v525_v2, %v521_v62 }
  0xf9   :  { %v1771_v6 = vpop.eup %1770 }
  0xfa   :  { %v532_v5 = vmul.f32 %v1771_v6, %v526_v4 }
  0xfc   :  { %533 = vst [vmem:[#allocation10] sm:$0xff] %v532_v5  ;;  %557 = vmatmul.f32.vlgmr.msra.gmra.mxu0 %v532_v5  ;;  %577 = vmatmul.f32.vlgmr.msra.gmra.mxu1 %v532_v5 }
  0xfd   :  { %597 = vmatmul.f32.vlgmr.msra.gmra.mxu2 %v532_v5  ;;  %617 = vmatmul.f32.vlgmr.msra.gmra.mxu3 %v532_v5 }
  0xfe   :  { %853 = vmatpush.msra.mxu0 %v2163_v9  ;;  %873 = vmatpush.msra.mxu1 %v2165_v10  ;;  %v3276_v9 = vld [vmem:[#allocation18_spill] sm:$0xff]  ;;  %v3277_v10 = vld [vmem:[#allocation19_spill] sm:$0xff] }
  0xff   :  { %893 = vmatpush.msra.mxu2 %v2181_v15  ;;  %913 = vmatpush.msra.mxu3 %v2169_v11  ;;  %v3278_v11 = vld [vmem:[#allocation20_spill] sm:$0xff] }
 0x100   :  { %854 = vmatpush.msra.mxu0 %v2173_v12  ;;  %874 = vmatpush.msra.mxu1 %v2175_v13  ;;  %v3279_v12 = vld [vmem:[#allocation22_spill] sm:$0xff]  ;;  %v3280_v13 = vld [vmem:[#allocation21_spill] sm:$0xff]  ;;  %v3282_v15 = vld [vmem:[#allocation24_spill] sm:$0xff] }
 0x101   :  { %894 = vmatpush.msra.mxu2 %v2189_v18  ;;  %914 = vmatpush.msra.mxu3 %v2179_v14  ;;  %v3281_v14 = vld [vmem:[#allocation23_spill] sm:$0xff] }
 0x102   :  { %855 = vmatpush.msra.mxu0 %v2184_v16  ;;  %875 = vmatpush.msra.mxu1 %v2186_v17  ;;  %v3283_v16 = vld [vmem:[#allocation26_spill] sm:$0xff]  ;;  %v3284_v17 = vld [vmem:[#allocation25_spill] sm:$0xff]  ;;  %v3285_v18 = vld [vmem:[#allocation27_spill] sm:$0xff] }
 0x103   :  { %895 = vmatpush.msra.mxu2 %v2200_v21  ;;  %915 = vmatpush.msra.mxu3 %v2193_v19  ;;  %v3286_v19 = vld [vmem:[#allocation28_spill] sm:$0xff]  ;;  %v3287_v21 = vld [vmem:[#allocation30_spill] sm:$0xff] }
 0x104   :  { %856 = vmatpush.msra.mxu0 %v2204_v22  ;;  %876 = vmatpush.msra.mxu1 %v2206_v23  ;;  %v3288_v22 = vld [vmem:[#allocation29_spill] sm:$0xff]  ;;  %v3289_v23 = vld [vmem:[#allocation31_spill] sm:$0xff] }
 0x105   :  { %896 = vmatpush.msra.mxu2 %v2214_v25  ;;  %916 = vmatpush.msra.mxu3 %v2212_v24  ;;  %v3290_v24 = vld [vmem:[#allocation32_spill] sm:$0xff]  ;;  %v3291_v25 = vld [vmem:[#allocation34_spill] sm:$0xff] }
 0x106   :  { %857 = vmatpush.msra.mxu0 %v2218_v26  ;;  %877 = vmatpush.msra.mxu1 %v2220_v27  ;;  %v3292_v26 = vld [vmem:[#allocation33_spill] sm:$0xff]  ;;  %v3293_v27 = vld [vmem:[#allocation35_spill] sm:$0xff] }
 0x107   :  { %897 = vmatpush.msra.mxu2 %v2226_v29  ;;  %917 = vmatpush.msra.mxu3 %v2224_v28  ;;  %v3294_v28 = vld [vmem:[#allocation36_spill] sm:$0xff]  ;;  %v3295_v29 = vld [vmem:[#allocation37_spill] sm:$0xff] }
 0x108   :  { %858 = vmatpush.msra.mxu0 %v2229_v30  ;;  %878 = vmatpush.msra.mxu1 %v2231_v31  ;;  %v3296_v30 = vld [vmem:[#allocation38_spill] sm:$0xff]  ;;  %v3297_v31 = vld [vmem:[#allocation39_spill] sm:$0xff] }
 0x109   :  { %898 = vmatpush.msra.mxu2 %v2238_v33  ;;  %918 = vmatpush.msra.mxu3 %v2236_v32  ;;  %v3298_v32 = vld [vmem:[#allocation40_spill] sm:$0xff]  ;;  %v3299_v33 = vld [vmem:[#allocation41_spill] sm:$0xff] }
 0x10a   :  { %859 = vmatpush.msra.mxu0 %v2247_v35  ;;  %879 = vmatpush.msra.mxu1 %v2249_v36  ;;  %v3300_v35 = vld [vmem:[#allocation42_spill] sm:$0xff] }
 0x10b   :  { %899 = vmatpush.msra.mxu2 %v2257_v38  ;;  %919 = vmatpush.msra.mxu3 %v2255_v37  ;;  %v3301_v38 = vld [vmem:[#allocation43_spill] sm:$0xff] }
 0x10c   :  { %860 = vmatpush.msra.mxu0 %v2261_v39  ;;  %880 = vmatpush.msra.mxu1 %v2263_v40  ;;  %v3302_v40 = vld [vmem:[#allocation44_spill] sm:$0xff] }
 0x10d   :  { %900 = vmatpush.msra.mxu2 %v2269_v42  ;;  %920 = vmatpush.msra.mxu3 %v2267_v41 }
 0x10e   :  { %861 = vmatpush.msra.mxu0 %v2272_v43  ;;  %881 = vmatpush.msra.mxu1 %v2274_v44 }
 0x10f   :  { %901 = vmatpush.msra.mxu2 %v2281_v46  ;;  %921 = vmatpush.msra.mxu3 %v2279_v45  ;;  %v3303_v45 = vld [vmem:[#allocation46_spill] sm:$0xff] }
 0x110   :  { %862 = vmatpush.msra.mxu0 %v2290_v48  ;;  %882 = vmatpush.msra.mxu1 %v2292_v49 }
 0x111   :  { %902 = vmatpush.msra.mxu2 %v2300_v51  ;;  %922 = vmatpush.msra.mxu3 %v3276_v9 }
 0x112   :  { %863 = vmatpush.msra.mxu0 %v3277_v10  ;;  %883 = vmatpush.msra.mxu1 %v3278_v11 }
 0x113   :  { %903 = vmatpush.msra.mxu2 %v3279_v12  ;;  %923 = vmatpush.msra.mxu3 %v3280_v13 }
 0x114   :  { %864 = vmatpush.msra.mxu0 %v3281_v14  ;;  %884 = vmatpush.msra.mxu1 %v3282_v15 }
 0x115   :  { %904 = vmatpush.msra.mxu2 %v3283_v16  ;;  %924 = vmatpush.msra.mxu3 %v3284_v17 }
 0x116   :  { %865 = vmatpush.msra.mxu0 %v3285_v18  ;;  %885 = vmatpush.msra.mxu1 %v3286_v19 }
 0x117   :  { %905 = vmatpush.msra.mxu2 %v3287_v21  ;;  %925 = vmatpush.msra.mxu3 %v3288_v22 }
 0x118   :  { %866 = vmatpush.msra.mxu0 %v3289_v23  ;;  %886 = vmatpush.msra.mxu1 %v3290_v24 }
 0x119   :  { %906 = vmatpush.msra.mxu2 %v3291_v25  ;;  %926 = vmatpush.msra.mxu3 %v3292_v26 }
 0x11a   :  { %867 = vmatpush.msra.mxu0 %v3293_v27  ;;  %887 = vmatpush.msra.mxu1 %v3294_v28 }
 0x11b   :  { %907 = vmatpush.msra.mxu2 %v3295_v29  ;;  %927 = vmatpush.msra.mxu3 %v3296_v30  ;;  %v2692_v29 = vld [vmem:[#allocation5 + $0x1e8] sm:$0xff]  ;;  %v2695_v30 = vld [vmem:[#allocation5 + $0x1f0] sm:$0xff] }
 0x11c   :  { %868 = vmatpush.msra.mxu0 %v3297_v31  ;;  %888 = vmatpush.msra.mxu1 %v3298_v32 }
 0x11d   :  { %908 = vmatpush.msra.mxu2 %v3299_v33  ;;  %928 = vmatpush.msra.mxu3 %v3300_v35 }
 0x179   :  { %v558_v36 = vpop.f32.mrf.mxu0  ;;  %v578_v37 = vpop.f32.mrf.mxu1 }
 0x17a   :  { %v621_v39 = vadd.f32 %v558_v36, %v3301_v38  ;;  %v622_v41 = vadd.f32 %v578_v37, %v3302_v40  ;;  %v2698_v36 = vld [vmem:[#allocation5 + $0x1f8] sm:$0xff]  ;;  %v2701_v37 = vld [vmem:[#allocation5 + $0x1c0] sm:$0xff]  ;;  %v2704_v38 = vld [vmem:[#allocation5 + $0x1c8] sm:$0xff] }
 0x17b   :  { %v2710_v40 = vld [vmem:[#allocation5 + $0x1d8] sm:$0xff] }
 0x17c   :  { %v1726_v42 = vmul.f32 -1.442695, %v621_v39  ;;  %v1727_v43 = vmul.f32 -1.442695, %v622_v41  ;;  %v2707_v39 = vld [vmem:[#allocation5 + $0x1d0] sm:$0xff]  ;;  %v2713_v41 = vld [vmem:[#allocation5 + $0x1a0] sm:$0xff] }
 0x17e   :  { %1772 = vpow2.f32 %v1726_v42  ;;  %v2716_v42 = vld [vmem:[#allocation5 + $0x1a8] sm:$0xff] }
 0x17f   :  { %1774 = vpow2.f32 %v1727_v43  ;;  %v2719_v43 = vld [vmem:[#allocation5 + $0x1b0] sm:$0xff] }
 0x180   :  { %v618_v44 = vpop.f32.mrf.mxu3  ;;  %v598_v8 = vpop.f32.mrf.mxu2 }
 0x181   :  { %v624_v46 = vadd.f32 %v618_v44, %v3303_v45  ;;  %v623_v7 = vadd.f32 %v598_v8, %v3304_v58  ;;  %v2722_v44 = vld [vmem:[#allocation5 + $0x1b8] sm:$0xff]  ;;  %v2725_v45 = vld [vmem:[#allocation5 + $0x180] sm:$0xff] }
 0x182   :  { %v2746_v8 = vld [vmem:[#allocation5 + $0x178] sm:$0xff] }
 0x183   :  { %v1728_v48 = vmul.f32 -1.442695, %v624_v46  ;;  %v2728_v46 = vld [vmem:[#allocation5 + $0x188] sm:$0xff]  ;;  %v2758_v58 = vld [vmem:[#allocation5 + $0x158] sm:$0xff] }
 0x184   :  { %v1773_v49 = vpop.eup %1772 }
 0x185   :  { %v1775_v50 = vpop.eup %1774  ;;  %v628_v51 = vadd.f32 1.0, %v1773_v49  ;;  %1776 = vpow2.f32 %v1728_v48  ;;  %v2731_v48 = vld [vmem:[#allocation5 + $0x190] sm:$0xff]  ;;  %v2734_v49 = vld [vmem:[#allocation5 + $0x198] sm:$0xff] }
 0x186   :  { %v647_v55 = vadd.f32 1.0, %v1775_v50  ;;  %v2737_v50 = vld [vmem:[#allocation5 + $0x160] sm:$0xff] }
 0x187   :  { %1778 = vrcp.f32 %v628_v51  ;;  %v640_v0 = vand.u32 2147483648, %v628_v51  ;;  %v638_v56 = vand.u32 2147483647, %v628_v51  ;;  %vm634_vm15 = vweird.f32 %v628_v51 }
 0x188   :  { %1780 = vrcp.f32 %v647_v55  ;;  %v659_v34 = vand.u32 2147483648, %v647_v55  ;;  %v657_v3 = vand.u32 2147483647, %v647_v55  ;;  %vm653_vm0 = vweird.f32 %v647_v55 }
 0x189   :  { %v641_v6 = vor.u32 1.1754944e-38, %v640_v0  ;;  %vm639_vm3 = vcmp.eq.f32.partialorder %v638_v56, 8.507059e+37  ;;  %v2779_v0 = vld [vmem:[#allocation5 + $0x110] sm:$0xff]  ;;  %v2788_v56 = vld [vmem:[#allocation5 + $0xe8] sm:$0xff] }
 0x18a   :  { %v660_v9 = vor.u32 1.1754944e-38, %v659_v34  ;;  %vm658_vm4 = vcmp.eq.f32.partialorder %v657_v3, 8.507059e+37  ;;  %v2782_v34 = vld [vmem:[#allocation5 + $0x118] sm:$0xff] }
 0x18b   :  { %v1777_v54 = vpop.eup %1776  ;;  %v2794_v3 = vld [vmem:[#allocation5 + $0xf8] sm:$0xff] }
 0x18c   :  { %v667_v20 = vadd.f32 1.0, %v1777_v54  ;;  %v2749_v54 = vld [vmem:[#allocation5 + $0x140] sm:$0xff] }
 0x18d   :  { %v1779_v47 = vpop.eup %1778 }
 0x18e   :  { %v1781_v57 = vpop.eup %1780  ;;  %v630_v53 = vmul.f32 %v1779_v47, %v628_v51  ;;  %1782 = vrcp.f32 %v667_v20  ;;  %vm635_vm13 = vweird.f32 %v1779_v47  ;;  %v679_v22 = vand.u32 2147483648, %v667_v20  ;;  %v2740_v51 = vld [vmem:[#allocation5 + $0x168] sm:$0xff] }
 0x18f   :  { %v649_v52 = vmul.f32 %v1781_v57, %v647_v55  ;;  %1784 = vtanh.f32 %v623_v7  ;;  %vm654_vm14 = vweird.f32 %v1781_v57  ;;  %vm636_vm1 = vmor %vm634_vm15, %vm635_vm13  ;;  %vm673_vm6 = vweird.f32 %v667_v20  ;;  %v2743_v55 = vld [vmem:[#allocation5 + $0x170] sm:$0xff]  ;;  %v2761_v7 = vld [vmem:[#allocation5 + $0x120] sm:$0xff] }
 0x190   :  { %v631_v60 = vsub.f32 1.0, %v630_v53  ;;  %vm655_vm2 = vmor %vm653_vm0, %vm654_vm14  ;;  %v677_v23 = vand.u32 2147483647, %v667_v20  ;;  %v680_v25 = vor.u32 1.1754944e-38, %v679_v22  ;;  %v2767_v53 = vld [vmem:[#allocation5 + $0x130] sm:$0xff]  ;;  %v2845_v22 = vld [vmem:[#allocation5 + $0x40] sm:$0xff] }
 0x191   :  { %v650_v59 = vsub.f32 1.0, %v649_v52  ;;  %v2770_v52 = vld [vmem:[#allocation5 + $0x138] sm:$0xff]  ;;  %3319 = vst [vmem:[#allocation32_spill] sm:$0xff] %v2845_v22 }
 0x192   :  { %v632_v61 = vmul.f32 %v1779_v47, %v631_v60  ;;  %vm678_vm8 = vcmp.eq.f32.partialorder %v677_v23, 8.507059e+37  ;;  %v2773_v60 = vld [vmem:[#allocation5 + $0x100] sm:$0xff]  ;;  %v2848_v23 = vld [vmem:[#allocation5 + $0x48] sm:$0xff] }
 0x193   :  { %v651_v63 = vmul.f32 %v1781_v57, %v650_v59  ;;  %v2776_v59 = vld [vmem:[#allocation5 + $0x108] sm:$0xff]  ;;  %3320 = vst [vmem:[#allocation34_spill] sm:$0xff] %v2848_v23 }
 0x194   :  { %v1783_v62 = vpop.eup %1782  ;;  %v633_v2 = vadd.f32 %v1779_v47, %v632_v61  ;;  %v2785_v61 = vld [vmem:[#allocation5 + $0xe0] sm:$0xff] }
 0x195   :  { %v652_v4 = vadd.f32 %v1781_v57, %v651_v63  ;;  %v669_v5 = vmul.f32 %v1783_v62, %v667_v20  ;;  %v1785_v11 = vpop.eup %1784  ;;  %vm674_vm5 = vweird.f32 %v1783_v62  ;;  %v2752_v20 = vld [vmem:[#allocation5 + $0x148] sm:$0xff]  ;;  %v2791_v63 = vld [vmem:[#allocation5 + $0xf0] sm:$0xff] }
 0x196   :  { %v637_v10 = vsel %vm636_vm1, %v1779_v47, %v633_v2  ;;  %vm675_vm7 = vmor %vm673_vm6, %vm674_vm5  ;;  %v2755_v47 = vld [vmem:[#allocation5 + $0x150] sm:$0xff]  ;;  %v2800_v2 = vld [vmem:[#allocation5 + $0xc8] sm:$0xff] }
 0x197   :  { %v642_v12 = vsel %vm639_vm3, %v641_v6, %v637_v10  ;;  %v656_v13 = vsel %vm655_vm2, %v1781_v57, %v652_v4  ;;  %v670_v14 = vsub.f32 1.0, %v669_v5  ;;  %v2764_v57 = vld [vmem:[#allocation5 + $0x128] sm:$0xff]  ;;  %v2803_v6 = vld [vmem:[#allocation5 + $0xd0] sm:$0xff]  ;;  %v2806_v4 = vld [vmem:[#allocation5 + $0xd8] sm:$0xff] }
 0x198   :  { %v661_v15 = vsel %vm658_vm4, %v660_v9, %v656_v13  ;;  %v684_v16 = vmul.f32 %v1785_v11, %v642_v12  ;;  %3305 = vst [vmem:[#allocation18_spill] sm:$0xff] %v2803_v6  ;;  %v2809_v5 = vld [vmem:[#allocation5 + $0xa0] sm:$0xff]  ;;  %v2812_v9 = vld [vmem:[#allocation5 + $0xa8] sm:$0xff]  ;;  %v2815_v10 = vld [vmem:[#allocation5 + $0xb0] sm:$0xff] }
 0x199   :  { %v683_v17 = vmul.f32 %v661_v15, %v2614_v1  ;;  %v671_v18 = vmul.f32 %v1783_v62, %v670_v14  ;;  %v2689_v1 = vld [vmem:[#allocation5 + $0x1e0] sm:$0xff]  ;;  %3306 = vst [vmem:[#allocation19_spill] sm:$0xff] %v2806_v4  ;;  %v2818_v11 = vld [vmem:[#allocation5 + $0xb8] sm:$0xff]  ;;  %v2824_v13 = vld [vmem:[#allocation5 + $0x88] sm:$0xff] }
 0x19a   :  { %3307 = vst [vmem:[#allocation20_spill] sm:$0xff] %v2809_v5  ;;  %v2821_v12 = vld [vmem:[#allocation5 + $0x80] sm:$0xff]  ;;  %v2827_v14 = vld [vmem:[#allocation5 + $0x90] sm:$0xff]  ;;  %v2830_v15 = vld [vmem:[#allocation5 + $0x98] sm:$0xff] }
 0x19b   :  { %v2686_v19 = vadd.f32 %v684_v16, %v683_v17  ;;  %v672_v21 = vadd.f32 %v1783_v62, %v671_v18  ;;  %3308 = vst [vmem:[#allocation22_spill] sm:$0xff] %v2812_v9  ;;  %v2833_v16 = vld [vmem:[#allocation5 + $0x60] sm:$0xff]  ;;  %v2836_v17 = vld [vmem:[#allocation5 + $0x68] sm:$0xff]  ;;  %v2839_v18 = vld [vmem:[#allocation5 + $0x70] sm:$0xff] }
 0x19c   :  { %3309 = vst [vmem:[#allocation21_spill] sm:$0xff] %v2815_v10 }
 0x19d   :  { %1786 = vtanh.f32 %v2686_v19  ;;  %v676_v24 = vsel %vm675_vm7, %v1783_v62, %v672_v21  ;;  %v2797_v62 = vld [vmem:[#allocation5 + $0xc0] sm:$0xff]  ;;  %3310 = vst [vmem:[#allocation23_spill] sm:$0xff] %v2818_v11  ;;  %v2842_v21 = vld [vmem:[#allocation5 + $0x78] sm:$0xff] }
 0x19e   :  { %v681_v27 = vsel %vm678_vm8, %v680_v25, %v676_v24  ;;  %3311 = vst [vmem:[#allocation24_spill] sm:$0xff] %v2821_v12  ;;  %v2851_v24 = vld [vmem:[#allocation5 + $0x50] sm:$0xff]  ;;  %v2854_v25 = vld [vmem:[#allocation5 + $0x58] sm:$0xff] }
 0x19f   :  { %3312 = vst [vmem:[#allocation26_spill] sm:$0xff] %v2824_v13 }
 0x1a0   :  { %3313 = vst [vmem:[#allocation25_spill] sm:$0xff] %v2827_v14 }
 0x1a1   :  { %3314 = vst [vmem:[#allocation27_spill] sm:$0xff] %v2830_v15 }
 0x1a2   :  { %3315 = vst [vmem:[#allocation28_spill] sm:$0xff] %v2833_v16 }
 0x1a3   :  { %v1787_v26 = vpop.eup %1786  ;;  %3316 = vst [vmem:[#allocation30_spill] sm:$0xff] %v2836_v17 }
 0x1a4   :  { %v687_v28 = vmul.f32 %v1787_v26, %v681_v27  ;;  %3317 = vst [vmem:[#allocation29_spill] sm:$0xff] %v2839_v18  ;;  %v2857_v26 = vld [vmem:[#allocation5 + $0x20] sm:$0xff]  ;;  %v2860_v27 = vld [vmem:[#allocation5 + $0x28] sm:$0xff] }
 0x1a5   :  { %3318 = vst [vmem:[#allocation31_spill] sm:$0xff] %v2842_v21 }
 0x1a6   :  { %689 = vst [vmem:[#allocation10 + $0x8] sm:$0xff] %v687_v28  ;;  %713 = vmatmul.f32.vlgmr.msrb.gmra.mxu0 %v687_v28  ;;  %733 = vmatmul.f32.vlgmr.msrb.gmra.mxu1 %v687_v28 }
 0x1a7   :  { %753 = vmatmul.f32.vlgmr.msrb.gmra.mxu2 %v687_v28  ;;  %773 = vmatmul.f32.vlgmr.msrb.gmra.mxu3 %v687_v28  ;;  %3321 = vst [vmem:[#allocation33_spill] sm:$0xff] %v2851_v24  ;;  %v2863_v28 = vld [vmem:[#allocation5 + $0x30] sm:$0xff] }
 0x1a8   :  { %1009 = vmatpush.msrb.mxu0 %v2689_v1  ;;  %1029 = vmatpush.msrb.mxu1 %v2692_v29  ;;  %3322 = vst [vmem:[#allocation35_spill] sm:$0xff] %v2854_v25 }
 0x1a9   :  { %1049 = vmatpush.msrb.mxu2 %v2695_v30  ;;  %1069 = vmatpush.msrb.mxu3 %v2698_v36  ;;  %3323 = vst [vmem:[#allocation36_spill] sm:$0xff] %v2857_v26 }
 0x1aa   :  { %1010 = vmatpush.msrb.mxu0 %v2701_v37  ;;  %1030 = vmatpush.msrb.mxu1 %v2704_v38  ;;  %3324 = vst [vmem:[#allocation37_spill] sm:$0xff] %v2860_v27 }
 0x1ab   :  { %1050 = vmatpush.msrb.mxu2 %v2707_v39  ;;  %1070 = vmatpush.msrb.mxu3 %v2710_v40  ;;  %3325 = vst [vmem:[#allocation38_spill] sm:$0xff] %v2863_v28 }
 0x1ac   :  { %1011 = vmatpush.msrb.mxu0 %v2713_v41  ;;  %1031 = vmatpush.msrb.mxu1 %v2716_v42 }
 0x1ad   :  { %1051 = vmatpush.msrb.mxu2 %v2719_v43  ;;  %1071 = vmatpush.msrb.mxu3 %v2722_v44 }
 0x1ae   :  { %1012 = vmatpush.msrb.mxu0 %v2725_v45  ;;  %1032 = vmatpush.msrb.mxu1 %v2728_v46 }
 0x1af   :  { %1052 = vmatpush.msrb.mxu2 %v2731_v48  ;;  %1072 = vmatpush.msrb.mxu3 %v2734_v49 }
 0x1b0   :  { %1013 = vmatpush.msrb.mxu0 %v2737_v50  ;;  %1033 = vmatpush.msrb.mxu1 %v2740_v51 }
 0x1b1   :  { %1053 = vmatpush.msrb.mxu2 %v2743_v55  ;;  %1073 = vmatpush.msrb.mxu3 %v2746_v8 }
 0x1b2   :  { %1014 = vmatpush.msrb.mxu0 %v2749_v54  ;;  %1034 = vmatpush.msrb.mxu1 %v2752_v20 }
 0x1b3   :  { %1054 = vmatpush.msrb.mxu2 %v2755_v47  ;;  %1074 = vmatpush.msrb.mxu3 %v2758_v58 }
 0x1b4   :  { %1015 = vmatpush.msrb.mxu0 %v2761_v7  ;;  %1035 = vmatpush.msrb.mxu1 %v2764_v57 }
 0x1b5   :  { %1055 = vmatpush.msrb.mxu2 %v2767_v53  ;;  %1075 = vmatpush.msrb.mxu3 %v2770_v52 }
 0x1b6   :  { %1016 = vmatpush.msrb.mxu0 %v2773_v60  ;;  %1036 = vmatpush.msrb.mxu1 %v2776_v59 }
 0x1b7   :  { %1056 = vmatpush.msrb.mxu2 %v2779_v0  ;;  %1076 = vmatpush.msrb.mxu3 %v2782_v34 }
 0x1b8   :  { %1017 = vmatpush.msrb.mxu0 %v2785_v61  ;;  %1037 = vmatpush.msrb.mxu1 %v2788_v56 }
 0x1b9   :  { %1057 = vmatpush.msrb.mxu2 %v2791_v63  ;;  %1077 = vmatpush.msrb.mxu3 %v2794_v3 }
 0x1ba   :  { %1018 = vmatpush.msrb.mxu0 %v2797_v62  ;;  %1038 = vmatpush.msrb.mxu1 %v2800_v2 }
 0x1bb   :  { %1058 = vmatpush.msrb.mxu2 %v2803_v6  ;;  %1078 = vmatpush.msrb.mxu3 %v2806_v4 }
 0x1bc   :  { %1019 = vmatpush.msrb.mxu0 %v2809_v5  ;;  %1039 = vmatpush.msrb.mxu1 %v2812_v9 }
 0x1bd   :  { %1059 = vmatpush.msrb.mxu2 %v2815_v10  ;;  %1079 = vmatpush.msrb.mxu3 %v2818_v11 }
 0x1be   :  { %1020 = vmatpush.msrb.mxu0 %v2821_v12  ;;  %1040 = vmatpush.msrb.mxu1 %v2824_v13 }
 0x1bf   :  { %1060 = vmatpush.msrb.mxu2 %v2827_v14  ;;  %1080 = vmatpush.msrb.mxu3 %v2830_v15 }
 0x1c0   :  { %1021 = vmatpush.msrb.mxu0 %v2833_v16  ;;  %1041 = vmatpush.msrb.mxu1 %v2836_v17 }
 0x1c1   :  { %1061 = vmatpush.msrb.mxu2 %v2839_v18  ;;  %1081 = vmatpush.msrb.mxu3 %v2842_v21 }
 0x1c2   :  { %1022 = vmatpush.msrb.mxu0 %v2845_v22  ;;  %1042 = vmatpush.msrb.mxu1 %v2848_v23  ;;  %v2866_v23 = vld [vmem:[#allocation5 + $0x38] sm:$0xff]  ;;  %v3328_v22 = vld [vmem:[#allocation48_spill] sm:$0xff] }
 0x1c3   :  { %1062 = vmatpush.msrb.mxu2 %v2851_v24  ;;  %1082 = vmatpush.msrb.mxu3 %v2854_v25  ;;  %3326 = vst [vmem:[#allocation39_spill] sm:$0xff] %v2866_v23  ;;  %v3327_v24 = vld [vmem:[#allocation47_spill] sm:$0xff] }
 0x1c4   :  { %1023 = vmatpush.msrb.mxu0 %v2857_v26  ;;  %1043 = vmatpush.msrb.mxu1 %v2860_v27 }
 0x1c5   :  { %1063 = vmatpush.msrb.mxu2 %v2863_v28  ;;  %1083 = vmatpush.msrb.mxu3 %v2866_v23  ;;  %v3329_v23 = vld [vmem:[#allocation50_spill] sm:$0xff] }
 0x1c6   :  { %1024 = vmatpush.msrb.mxu0 %v3297_v31  ;;  %1044 = vmatpush.msrb.mxu1 %v3298_v32 }
 0x1c7   :  { %1064 = vmatpush.msrb.mxu2 %v3299_v33  ;;  %1084 = vmatpush.msrb.mxu3 %v3300_v35 }
 0x223   :  { %v714_v26 = vpop.f32.mrf.mxu0  ;;  %v734_v25 = vpop.f32.mrf.mxu1 }
 0x224   :  { %v777_v27 = vadd.f32 %v714_v26, %v3327_v24  ;;  %v778_v21 = vadd.f32 %v734_v25, %v3328_v22  ;;  %v3330_v22 = vld [vmem:[#allocation49_spill] sm:$0xff] }
 0x226   :  { %v1729_v18 = vmul.f32 -1.442695, %v777_v27  ;;  %v1730_v28 = vmul.f32 -1.442695, %v778_v21 }
 0x228   :  { %1788 = vpow2.f32 %v1729_v18 }
 0x229   :  { %1790 = vpow2.f32 %v1730_v28 }
 0x22a   :  { %v774_v17 = vpop.f32.mrf.mxu3  ;;  %v754_v35 = vpop.f32.mrf.mxu2 }
 0x22b   :  { %v780_v16 = vadd.f32 %v774_v17, %v3329_v23  ;;  %v779_v25 = vadd.f32 %v754_v35, %v3330_v22 }
 0x22d   :  { %v1731_v31 = vmul.f32 -1.442695, %v780_v16 }
 0x22e   :  { %v1789_v15 = vpop.eup %1788 }
 0x22f   :  { %v1791_v32 = vpop.eup %1790  ;;  %v784_v14 = vadd.f32 1.0, %v1789_v15  ;;  %1792 = vpow2.f32 %v1731_v31 }
 0x230   :  { %v803_v33 = vadd.f32 1.0, %v1791_v32 }
 0x231   :  { %1794 = vrcp.f32 %v784_v14  ;;  %v796_v16 = vand.u32 2147483648, %v784_v14  ;;  %v794_v31 = vand.u32 2147483647, %v784_v14  ;;  %vm790_vm11 = vweird.f32 %v784_v14 }
 0x232   :  { %1796 = vrcp.f32 %v803_v33  ;;  %v815_v23 = vand.u32 2147483648, %v803_v33  ;;  %v813_v12 = vand.u32 2147483647, %v803_v33  ;;  %vm809_vm12 = vweird.f32 %v803_v33 }
 0x233   :  { %v797_v35 = vor.u32 1.1754944e-38, %v796_v16  ;;  %vm795_vm15 = vcmp.eq.f32.partialorder %v794_v31, 8.507059e+37 }
 0x234   :  { %vm814_vm0 = vcmp.eq.f32.partialorder %v813_v12, 8.507059e+37 }
 0x235   :  { %v1793_v13 = vpop.eup %1792 }
 0x236   :  { %v823_v24 = vadd.f32 1.0, %v1793_v13 }
 0x237   :  { %v1795_v26 = vpop.eup %1794 }
 0x238   :  { %v1797_v21 = vpop.eup %1796  ;;  %v786_v18 = vmul.f32 %v1795_v26, %v784_v14  ;;  %1798 = vrcp.f32 %v823_v24  ;;  %vm791_vm9 = vweird.f32 %v1795_v26  ;;  %v835_v16 = vand.u32 2147483648, %v823_v24 }
 0x239   :  { %v805_v27 = vmul.f32 %v1797_v21, %v803_v33  ;;  %1800 = vtanh.f32 %v779_v25  ;;  %vm810_vm10 = vweird.f32 %v1797_v21  ;;  %vm792_vm13 = vmor %vm790_vm11, %vm791_vm9  ;;  %vm829_vm2 = vweird.f32 %v823_v24 }
 0x23a   :  { %v787_v28 = vsub.f32 1.0, %v786_v18  ;;  %vm811_vm14 = vmor %vm809_vm12, %vm810_vm10  ;;  %v816_v18 = vor.u32 1.1754944e-38, %v815_v23  ;;  %v836_v31 = vor.u32 1.1754944e-38, %v835_v16  ;;  %v3349_v16 = vld [vmem:[#allocation36_spill] sm:$0xff] }
 0x23b   :  { %v806_v17 = vsub.f32 1.0, %v805_v27 }
 0x23c   :  { %v788_v15 = vmul.f32 %v1795_v26, %v787_v28 }
 0x23d   :  { %v807_v32 = vmul.f32 %v1797_v21, %v806_v17 }
 0x23e   :  { %v1799_v11 = vpop.eup %1798  ;;  %v789_v13 = vadd.f32 %v1795_v26, %v788_v15 }
 0x23f   :  { %v808_v22 = vadd.f32 %v1797_v21, %v807_v32  ;;  %v825_v10 = vmul.f32 %v1799_v11, %v823_v24  ;;  %v1801_v25 = vpop.eup %1800  ;;  %vm830_vm1 = vweird.f32 %v1799_v11  ;;  %v3338_v32 = vld [vmem:[#allocation26_spill] sm:$0xff] }
 0x240   :  { %v793_v27 = vsel %vm792_vm13, %v1795_v26, %v789_v13  ;;  %v833_v26 = vand.u32 2147483647, %v823_v24  ;;  %vm831_vm3 = vmor %vm829_vm2, %vm830_vm1  ;;  %v3337_v24 = vld [vmem:[#allocation24_spill] sm:$0xff]  ;;  %v3339_v13 = vld [vmem:[#allocation25_spill] sm:$0xff] }
 0x241   :  { %v798_v9 = vsel %vm795_vm15, %v797_v35, %v793_v27  ;;  %v812_v28 = vsel %vm811_vm14, %v1797_v21, %v808_v22  ;;  %v826_v5 = vsub.f32 1.0, %v825_v10  ;;  %v3340_v35 = vld [vmem:[#allocation27_spill] sm:$0xff]  ;;  %v3341_v22 = vld [vmem:[#allocation28_spill] sm:$0xff]  ;;  %v3343_v27 = vld [vmem:[#allocation29_spill] sm:$0xff] }
 0x242   :  { %v817_v17 = vsel %vm814_vm0, %v816_v18, %v812_v28  ;;  %v840_v4 = vmul.f32 %v1801_v25, %v798_v9  ;;  %vm834_vm4 = vcmp.eq.f32.partialorder %v833_v26, 8.507059e+37  ;;  %v3335_v9 = vld [vmem:[#allocation21_spill] sm:$0xff]  ;;  %v3342_v18 = vld [vmem:[#allocation30_spill] sm:$0xff]  ;;  %v3344_v25 = vld [vmem:[#allocation31_spill] sm:$0xff] }
 0x243   :  { %v839_v6 = vmul.f32 %v817_v17, %v2686_v19  ;;  %v827_v15 = vmul.f32 %v1799_v11, %v826_v5  ;;  %v3331_v19 = vld [vmem:[#allocation18_spill] sm:$0xff]  ;;  %v3345_v28 = vld [vmem:[#allocation32_spill] sm:$0xff]  ;;  %v3350_v26 = vld [vmem:[#allocation37_spill] sm:$0xff] }
 0x244   :  { %v3334_v5 = vld [vmem:[#allocation22_spill] sm:$0xff] }
 0x245   :  { %v2878_v14 = vadd.f32 %v840_v4, %v839_v6  ;;  %v828_v33 = vadd.f32 %v1799_v11, %v827_v15  ;;  %v3332_v6 = vld [vmem:[#allocation19_spill] sm:$0xff]  ;;  %v3333_v4 = vld [vmem:[#allocation20_spill] sm:$0xff]  ;;  %v3346_v17 = vld [vmem:[#allocation34_spill] sm:$0xff] }
 0x246   :  { %v3347_v15 = vld [vmem:[#allocation33_spill] sm:$0xff] }
 0x247   :  { %1802 = vtanh.f32 %v2878_v14  ;;  %v832_v23 = vsel %vm831_vm3, %v1799_v11, %v828_v33  ;;  %v3336_v11 = vld [vmem:[#allocation23_spill] sm:$0xff] }
 0x248   :  { %v837_v10 = vsel %vm834_vm4, %v836_v31, %v832_v23  ;;  %v3348_v33 = vld [vmem:[#allocation35_spill] sm:$0xff]  ;;  %v3351_v23 = vld [vmem:[#allocation38_spill] sm:$0xff] }
 0x249   :  { %v3352_v31 = vld [vmem:[#allocation39_spill] sm:$0xff] }
 0x24d   :  { %v1803_v12 = vpop.eup %1802 }
 0x24e   :  { %v843_v21 = vmul.f32 %v1803_v12, %v837_v10  ;;  %v2941_v12 = vld [vmem:[#allocation5] sm:$0xff]  ;;  %v2944_v10 = vld [vmem:[#allocation5 + $0x8] sm:$0xff] }
 0x24f   :  { %3353 = vst [vmem:[#allocation40_spill] sm:$0xff] %v2941_v12 }
 0x250   :  { %845 = vst [vmem:[#allocation10 + $0x10] sm:$0xff] %v843_v21  ;;  %869 = vmatmul.f32.vlgmr.msra.gmra.mxu0 %v843_v21  ;;  %889 = vmatmul.f32.vlgmr.msra.gmra.mxu1 %v843_v21 }
 0x251   :  { %909 = vmatmul.f32.vlgmr.msra.gmra.mxu2 %v843_v21  ;;  %929 = vmatmul.f32.vlgmr.msra.gmra.mxu3 %v843_v21  ;;  %3354 = vst [vmem:[#allocation41_spill] sm:$0xff] %v2944_v10  ;;  %v2947_v21 = vld [vmem:[#allocation5 + $0x10] sm:$0xff] }
 0x252   :  { %1165 = vmatpush.msra.mxu0 %v2689_v1  ;;  %1185 = vmatpush.msra.mxu1 %v2692_v29  ;;  %3355 = vst [vmem:[#allocation42_spill] sm:$0xff] %v2947_v21 }
 0x253   :  { %1205 = vmatpush.msra.mxu2 %v2695_v30  ;;  %1225 = vmatpush.msra.mxu3 %v2698_v36 }
 0x254   :  { %1166 = vmatpush.msra.mxu0 %v2701_v37  ;;  %1186 = vmatpush.msra.mxu1 %v2704_v38 }
 0x255   :  { %1206 = vmatpush.msra.mxu2 %v2707_v39  ;;  %1226 = vmatpush.msra.mxu3 %v2710_v40 }
 0x256   :  { %1167 = vmatpush.msra.mxu0 %v2713_v41  ;;  %1187 = vmatpush.msra.mxu1 %v2716_v42 }
 0x257   :  { %1207 = vmatpush.msra.mxu2 %v2719_v43  ;;  %1227 = vmatpush.msra.mxu3 %v2722_v44 }
 0x258   :  { %1168 = vmatpush.msra.mxu0 %v2725_v45  ;;  %1188 = vmatpush.msra.mxu1 %v2728_v46 }
 0x259   :  { %1208 = vmatpush.msra.mxu2 %v2731_v48  ;;  %1228 = vmatpush.msra.mxu3 %v2734_v49 }
 0x25a   :  { %1169 = vmatpush.msra.mxu0 %v2737_v50  ;;  %1189 = vmatpush.msra.mxu1 %v2740_v51 }
 0x25b   :  { %1209 = vmatpush.msra.mxu2 %v2743_v55  ;;  %1229 = vmatpush.msra.mxu3 %v2746_v8 }
 0x25c   :  { %1170 = vmatpush.msra.mxu0 %v2749_v54  ;;  %1190 = vmatpush.msra.mxu1 %v2752_v20 }
 0x25d   :  { %1210 = vmatpush.msra.mxu2 %v2755_v47  ;;  %1230 = vmatpush.msra.mxu3 %v2758_v58 }
 0x25e   :  { %1171 = vmatpush.msra.mxu0 %v2761_v7  ;;  %1191 = vmatpush.msra.mxu1 %v2764_v57 }
 0x25f   :  { %1211 = vmatpush.msra.mxu2 %v2767_v53  ;;  %1231 = vmatpush.msra.mxu3 %v2770_v52 }
 0x260   :  { %1172 = vmatpush.msra.mxu0 %v2773_v60  ;;  %1192 = vmatpush.msra.mxu1 %v2776_v59 }
 0x261   :  { %1212 = vmatpush.msra.mxu2 %v2779_v0  ;;  %1232 = vmatpush.msra.mxu3 %v2782_v34 }
 0x262   :  { %1173 = vmatpush.msra.mxu0 %v2785_v61  ;;  %1193 = vmatpush.msra.mxu1 %v2788_v56 }
 0x263   :  { %1213 = vmatpush.msra.mxu2 %v2791_v63  ;;  %1233 = vmatpush.msra.mxu3 %v2794_v3 }
 0x264   :  { %1174 = vmatpush.msra.mxu0 %v2797_v62  ;;  %1194 = vmatpush.msra.mxu1 %v2800_v2 }
 0x265   :  { %1214 = vmatpush.msra.mxu2 %v3331_v19  ;;  %1234 = vmatpush.msra.mxu3 %v3332_v6 }
 0x266   :  { %1175 = vmatpush.msra.mxu0 %v3333_v4  ;;  %1195 = vmatpush.msra.mxu1 %v3334_v5 }
 0x267   :  { %1215 = vmatpush.msra.mxu2 %v3335_v9  ;;  %1235 = vmatpush.msra.mxu3 %v3336_v11 }
 0x268   :  { %1176 = vmatpush.msra.mxu0 %v3337_v24  ;;  %1196 = vmatpush.msra.mxu1 %v3338_v32 }
 0x269   :  { %1216 = vmatpush.msra.mxu2 %v3339_v13  ;;  %1236 = vmatpush.msra.mxu3 %v3340_v35 }
 0x26a   :  { %1177 = vmatpush.msra.mxu0 %v3341_v22  ;;  %1197 = vmatpush.msra.mxu1 %v3342_v18 }
 0x26b   :  { %1217 = vmatpush.msra.mxu2 %v3343_v27  ;;  %1237 = vmatpush.msra.mxu3 %v3344_v25 }
 0x26c   :  { %1178 = vmatpush.msra.mxu0 %v3345_v28  ;;  %1198 = vmatpush.msra.mxu1 %v3346_v17 }
 0x26d   :  { %1218 = vmatpush.msra.mxu2 %v3347_v15  ;;  %1238 = vmatpush.msra.mxu3 %v3348_v33  ;;  %v2950_v33 = vld [vmem:[#allocation5 + $0x18] sm:$0xff]  ;;  %v3358_v15 = vld [vmem:[#allocation52_spill] sm:$0xff] }
 0x26e   :  { %1179 = vmatpush.msra.mxu0 %v3349_v16  ;;  %1199 = vmatpush.msra.mxu1 %v3350_v26  ;;  %3356 = vst [vmem:[#allocation43_spill] sm:$0xff] %v2950_v33  ;;  %v3357_v16 = vld [vmem:[#allocation51_spill] sm:$0xff] }
 0x26f   :  { %1219 = vmatpush.msra.mxu2 %v3351_v23  ;;  %1239 = vmatpush.msra.mxu3 %v3352_v31 }
 0x270   :  { %1180 = vmatpush.msra.mxu0 %v2941_v12  ;;  %1200 = vmatpush.msra.mxu1 %v2944_v10  ;;  %v3359_v10 = vld [vmem:[#allocation54_spill] sm:$0xff] }
 0x271   :  { %1220 = vmatpush.msra.mxu2 %v2947_v21  ;;  %1240 = vmatpush.msra.mxu3 %v2950_v33 }
 0x2cd   :  { %v870_v26 = vpop.f32.mrf.mxu0  ;;  %v890_v23 = vpop.f32.mrf.mxu1 }
 0x2ce   :  { %v933_v31 = vadd.f32 %v870_v26, %v3357_v16  ;;  %v934_v17 = vadd.f32 %v890_v23, %v3358_v15  ;;  %v3360_v15 = vld [vmem:[#allocation53_spill] sm:$0xff] }
 0x2d0   :  { %v1732_v28 = vmul.f32 -1.442695, %v933_v31  ;;  %v1733_v12 = vmul.f32 -1.442695, %v934_v17 }
 0x2d2   :  { %1804 = vpow2.f32 %v1732_v28 }
 0x2d3   :  { %1806 = vpow2.f32 %v1733_v12 }
 0x2d4   :  { %v930_v25 = vpop.f32.mrf.mxu3  ;;  %v910_v33 = vpop.f32.mrf.mxu2 }
 0x2d5   :  { %v936_v27 = vadd.f32 %v930_v25, %v3359_v10  ;;  %v935_v23 = vadd.f32 %v910_v33, %v3360_v15 }
 0x2d7   :  { %v1734_v18 = vmul.f32 -1.442695, %v936_v27 }
 0x2d8   :  { %v1805_v22 = vpop.eup %1804 }
 0x2d9   :  { %v1807_v21 = vpop.eup %1806  ;;  %v940_v35 = vadd.f32 1.0, %v1805_v22  ;;  %1808 = vpow2.f32 %v1734_v18 }
 0x2da   :  { %v959_v13 = vadd.f32 1.0, %v1807_v21 }
 0x2db   :  { %1810 = vrcp.f32 %v940_v35  ;;  %v952_v27 = vand.u32 2147483648, %v940_v35  ;;  %v950_v18 = vand.u32 2147483647, %v940_v35  ;;  %vm946_vm7 = vweird.f32 %v940_v35 }
 0x2dc   :  { %1812 = vrcp.f32 %v959_v13  ;;  %v971_v10 = vand.u32 2147483648, %v959_v13  ;;  %v969_v24 = vand.u32 2147483647, %v959_v13  ;;  %vm965_vm8 = vweird.f32 %v959_v13 }
 0x2dd   :  { %v953_v33 = vor.u32 1.1754944e-38, %v952_v27  ;;  %vm951_vm11 = vcmp.eq.f32.partialorder %v950_v18, 8.507059e+37 }
 0x2de   :  { %vm970_vm12 = vcmp.eq.f32.partialorder %v969_v24, 8.507059e+37 }
 0x2df   :  { %v1809_v32 = vpop.eup %1808 }
 0x2e0   :  { %v979_v16 = vadd.f32 1.0, %v1809_v32 }
 0x2e1   :  { %v1811_v26 = vpop.eup %1810 }
 0x2e2   :  { %v1813_v17 = vpop.eup %1812  ;;  %v942_v28 = vmul.f32 %v1811_v26, %v940_v35  ;;  %1814 = vrcp.f32 %v979_v16  ;;  %vm947_vm5 = vweird.f32 %v1811_v26  ;;  %v991_v27 = vand.u32 2147483648, %v979_v16 }
 0x2e3   :  { %v961_v31 = vmul.f32 %v1813_v17, %v959_v13  ;;  %1816 = vtanh.f32 %v935_v23  ;;  %vm966_vm6 = vweird.f32 %v1813_v17  ;;  %vm948_vm9 = vmor %vm946_vm7, %vm947_vm5  ;;  %vm985_vm14 = vweird.f32 %v979_v16 }
 0x2e4   :  { %v943_v12 = vsub.f32 1.0, %v942_v28  ;;  %vm967_vm10 = vmor %vm965_vm8, %vm966_vm6  ;;  %v972_v28 = vor.u32 1.1754944e-38, %v971_v10  ;;  %v992_v18 = vor.u32 1.1754944e-38, %v991_v27  ;;  %v3379_v27 = vld [vmem:[#allocation36_spill] sm:$0xff] }
 0x2e5   :  { %v962_v25 = vsub.f32 1.0, %v961_v31 }
 0x2e6   :  { %v944_v22 = vmul.f32 %v1811_v26, %v943_v12 }
 0x2e7   :  { %v963_v21 = vmul.f32 %v1813_v17, %v962_v25 }
 0x2e8   :  { %v1815_v11 = vpop.eup %1814  ;;  %v945_v32 = vadd.f32 %v1811_v26, %v944_v22 }
 0x2e9   :  { %v964_v15 = vadd.f32 %v1813_v17, %v963_v21  ;;  %v981_v9 = vmul.f32 %v1815_v11, %v979_v16  ;;  %v1817_v23 = vpop.eup %1816  ;;  %vm986_vm13 = vweird.f32 %v1815_v11  ;;  %v3368_v21 = vld [vmem:[#allocation26_spill] sm:$0xff] }
 0x2ea   :  { %v949_v31 = vsel %vm948_vm9, %v1811_v26, %v945_v32  ;;  %v989_v26 = vand.u32 2147483647, %v979_v16  ;;  %vm987_vm15 = vmor %vm985_vm14, %vm986_vm13  ;;  %v3367_v16 = vld [vmem:[#allocation24_spill] sm:$0xff]  ;;  %v3369_v32 = vld [vmem:[#allocation25_spill] sm:$0xff] }
 0x2eb   :  { %v954_v5 = vsel %vm951_vm11, %v953_v33, %v949_v31  ;;  %v968_v12 = vsel %vm967_vm10, %v1813_v17, %v964_v15  ;;  %v982_v4 = vsub.f32 1.0, %v981_v9  ;;  %v3370_v33 = vld [vmem:[#allocation27_spill] sm:$0xff]  ;;  %v3371_v15 = vld [vmem:[#allocation28_spill] sm:$0xff]  ;;  %v3373_v31 = vld [vmem:[#allocation29_spill] sm:$0xff] }
 0x2ec   :  { %v973_v25 = vsel %vm970_vm12, %v972_v28, %v968_v12  ;;  %v996_v6 = vmul.f32 %v1817_v23, %v954_v5  ;;  %vm990_vm0 = vcmp.eq.f32.partialorder %v989_v26, 8.507059e+37  ;;  %v3365_v5 = vld [vmem:[#allocation21_spill] sm:$0xff]  ;;  %v3372_v28 = vld [vmem:[#allocation30_spill] sm:$0xff]  ;;  %v3374_v23 = vld [vmem:[#allocation31_spill] sm:$0xff] }
 0x2ed   :  { %v995_v19 = vmul.f32 %v973_v25, %v2878_v14  ;;  %v983_v22 = vmul.f32 %v1815_v11, %v982_v4  ;;  %v3361_v14 = vld [vmem:[#allocation18_spill] sm:$0xff]  ;;  %v3375_v12 = vld [vmem:[#allocation32_spill] sm:$0xff]  ;;  %v3380_v26 = vld [vmem:[#allocation37_spill] sm:$0xff] }
 0x2ee   :  { %v3364_v4 = vld [vmem:[#allocation22_spill] sm:$0xff] }
 0x2ef   :  { %v2958_v35 = vadd.f32 %v996_v6, %v995_v19  ;;  %v984_v13 = vadd.f32 %v1815_v11, %v983_v22  ;;  %v3362_v19 = vld [vmem:[#allocation19_spill] sm:$0xff]  ;;  %v3363_v6 = vld [vmem:[#allocation20_spill] sm:$0xff]  ;;  %v3376_v25 = vld [vmem:[#allocation34_spill] sm:$0xff] }
 0x2f0   :  { %v3377_v22 = vld [vmem:[#allocation33_spill] sm:$0xff] }
 0x2f1   :  { %1818 = vtanh.f32 %v2958_v35  ;;  %v988_v10 = vsel %vm987_vm15, %v1815_v11, %v984_v13  ;;  %v3366_v11 = vld [vmem:[#allocation23_spill] sm:$0xff] }
 0x2f2   :  { %v993_v9 = vsel %vm990_vm0, %v992_v18, %v988_v10  ;;  %v3378_v13 = vld [vmem:[#allocation35_spill] sm:$0xff]  ;;  %v3381_v10 = vld [vmem:[#allocation38_spill] sm:$0xff] }
 0x2f3   :  { %v3382_v18 = vld [vmem:[#allocation39_spill] sm:$0xff] }
 0x2f7   :  { %v1819_v24 = vpop.eup %1818 }
 0x2f8   :  { %v999_v17 = vmul.f32 %v1819_v24, %v993_v9  ;;  %v3383_v24 = vld [vmem:[#allocation40_spill] sm:$0xff]  ;;  %v3384_v9 = vld [vmem:[#allocation41_spill] sm:$0xff] }
 0x2fa   :  { %1001 = vst [vmem:[#allocation10 + $0x18] sm:$0xff] %v999_v17  ;;  %1025 = vmatmul.f32.vlgmr.msrb.gmra.mxu0 %v999_v17  ;;  %1045 = vmatmul.f32.vlgmr.msrb.gmra.mxu1 %v999_v17 }
 0x2fb   :  { %1065 = vmatmul.f32.vlgmr.msrb.gmra.mxu2 %v999_v17  ;;  %1085 = vmatmul.f32.vlgmr.msrb.gmra.mxu3 %v999_v17  ;;  %v3385_v17 = vld [vmem:[#allocation42_spill] sm:$0xff] }
 0x2fc   :  { %1321 = vmatpush.msrb.mxu0 %v2689_v1  ;;  %1341 = vmatpush.msrb.mxu1 %v2692_v29 }
 0x2fd   :  { %1361 = vmatpush.msrb.mxu2 %v2695_v30  ;;  %1381 = vmatpush.msrb.mxu3 %v2698_v36 }
 0x2fe   :  { %1322 = vmatpush.msrb.mxu0 %v2701_v37  ;;  %1342 = vmatpush.msrb.mxu1 %v2704_v38 }
 0x2ff   :  { %1362 = vmatpush.msrb.mxu2 %v2707_v39  ;;  %1382 = vmatpush.msrb.mxu3 %v2710_v40 }
 0x300   :  { %1323 = vmatpush.msrb.mxu0 %v2713_v41  ;;  %1343 = vmatpush.msrb.mxu1 %v2716_v42 }
 0x301   :  { %1363 = vmatpush.msrb.mxu2 %v2719_v43  ;;  %1383 = vmatpush.msrb.mxu3 %v2722_v44 }
 0x302   :  { %1324 = vmatpush.msrb.mxu0 %v2725_v45  ;;  %1344 = vmatpush.msrb.mxu1 %v2728_v46 }
 0x303   :  { %1364 = vmatpush.msrb.mxu2 %v2731_v48  ;;  %1384 = vmatpush.msrb.mxu3 %v2734_v49 }
 0x304   :  { %1325 = vmatpush.msrb.mxu0 %v2737_v50  ;;  %1345 = vmatpush.msrb.mxu1 %v2740_v51 }
 0x305   :  { %1365 = vmatpush.msrb.mxu2 %v2743_v55  ;;  %1385 = vmatpush.msrb.mxu3 %v2746_v8 }
 0x306   :  { %1326 = vmatpush.msrb.mxu0 %v2749_v54  ;;  %1346 = vmatpush.msrb.mxu1 %v2752_v20 }
 0x307   :  { %1366 = vmatpush.msrb.mxu2 %v2755_v47  ;;  %1386 = vmatpush.msrb.mxu3 %v2758_v58 }
 0x308   :  { %1327 = vmatpush.msrb.mxu0 %v2761_v7  ;;  %1347 = vmatpush.msrb.mxu1 %v2764_v57 }
 0x309   :  { %1367 = vmatpush.msrb.mxu2 %v2767_v53  ;;  %1387 = vmatpush.msrb.mxu3 %v2770_v52 }
 0x30a   :  { %1328 = vmatpush.msrb.mxu0 %v2773_v60  ;;  %1348 = vmatpush.msrb.mxu1 %v2776_v59 }
 0x30b   :  { %1368 = vmatpush.msrb.mxu2 %v2779_v0  ;;  %1388 = vmatpush.msrb.mxu3 %v2782_v34 }
 0x30c   :  { %1329 = vmatpush.msrb.mxu0 %v2785_v61  ;;  %1349 = vmatpush.msrb.mxu1 %v2788_v56 }
 0x30d   :  { %1369 = vmatpush.msrb.mxu2 %v2791_v63  ;;  %1389 = vmatpush.msrb.mxu3 %v2794_v3 }
 0x30e   :  { %1330 = vmatpush.msrb.mxu0 %v2797_v62  ;;  %1350 = vmatpush.msrb.mxu1 %v2800_v2 }
 0x30f   :  { %1370 = vmatpush.msrb.mxu2 %v3361_v14  ;;  %1390 = vmatpush.msrb.mxu3 %v3362_v19 }
 0x310   :  { %1331 = vmatpush.msrb.mxu0 %v3363_v6  ;;  %1351 = vmatpush.msrb.mxu1 %v3364_v4 }
 0x311   :  { %1371 = vmatpush.msrb.mxu2 %v3365_v5  ;;  %1391 = vmatpush.msrb.mxu3 %v3366_v11 }
 0x312   :  { %1332 = vmatpush.msrb.mxu0 %v3367_v16  ;;  %1352 = vmatpush.msrb.mxu1 %v3368_v21 }
 0x313   :  { %1372 = vmatpush.msrb.mxu2 %v3369_v32  ;;  %1392 = vmatpush.msrb.mxu3 %v3370_v33 }
 0x314   :  { %1333 = vmatpush.msrb.mxu0 %v3371_v15  ;;  %1353 = vmatpush.msrb.mxu1 %v3372_v28 }
 0x315   :  { %1373 = vmatpush.msrb.mxu2 %v3373_v31  ;;  %1393 = vmatpush.msrb.mxu3 %v3374_v23  ;;  %v3387_v23 = vld [vmem:[#allocation55_spill] sm:$0xff]  ;;  %v3388_v31 = vld [vmem:[#allocation56_spill] sm:$0xff] }
 0x316   :  { %1334 = vmatpush.msrb.mxu0 %v3375_v12  ;;  %1354 = vmatpush.msrb.mxu1 %v3376_v25  ;;  %v3386_v12 = vld [vmem:[#allocation43_spill] sm:$0xff] }
 0x317   :  { %1374 = vmatpush.msrb.mxu2 %v3377_v22  ;;  %1394 = vmatpush.msrb.mxu3 %v3378_v13 }
 0x318   :  { %1335 = vmatpush.msrb.mxu0 %v3379_v27  ;;  %1355 = vmatpush.msrb.mxu1 %v3380_v26 }
 0x319   :  { %1375 = vmatpush.msrb.mxu2 %v3381_v10  ;;  %1395 = vmatpush.msrb.mxu3 %v3382_v18  ;;  %v3389_v18 = vld [vmem:[#allocation58_spill] sm:$0xff] }
 0x31a   :  { %1336 = vmatpush.msrb.mxu0 %v3383_v24  ;;  %1356 = vmatpush.msrb.mxu1 %v3384_v9 }
 0x31b   :  { %1376 = vmatpush.msrb.mxu2 %v3385_v17  ;;  %1396 = vmatpush.msrb.mxu3 %v3386_v12 }
 0x377   :  { %v1026_v25 = vpop.f32.mrf.mxu0  ;;  %v1046_v22 = vpop.f32.mrf.mxu1 }
 0x378   :  { %v1089_v13 = vadd.f32 %v1026_v25, %v3387_v23  ;;  %v1090_v27 = vadd.f32 %v1046_v22, %v3388_v31  ;;  %v3390_v31 = vld [vmem:[#allocation57_spill] sm:$0xff] }
 0x37a   :  { %v1735_v28 = vmul.f32 -1.442695, %v1089_v13  ;;  %v1736_v26 = vmul.f32 -1.442695, %v1090_v27 }
 0x37c   :  { %1820 = vpow2.f32 %v1735_v28 }
 0x37d   :  { %1822 = vpow2.f32 %v1736_v26 }
 0x37e   :  { %v1086_v10 = vpop.f32.mrf.mxu3  ;;  %v1066_v12 = vpop.f32.mrf.mxu2 }
 0x37f   :  { %v1092_v15 = vadd.f32 %v1086_v10, %v3389_v18  ;;  %v1091_v22 = vadd.f32 %v1066_v12, %v3390_v31 }
 0x381   :  { %v1737_v24 = vmul.f32 -1.442695, %v1092_v15 }
 0x382   :  { %v1821_v33 = vpop.eup %1820 }
 0x383   :  { %v1823_v9 = vpop.eup %1822  ;;  %v1096_v32 = vadd.f32 1.0, %v1821_v33  ;;  %1824 = vpow2.f32 %v1737_v24 }
 0x384   :  { %v1115_v17 = vadd.f32 1.0, %v1823_v9 }
 0x385   :  { %1826 = vrcp.f32 %v1096_v32  ;;  %v1108_v15 = vand.u32 2147483648, %v1096_v32  ;;  %v1106_v24 = vand.u32 2147483647, %v1096_v32  ;;  %vm1102_vm3 = vweird.f32 %v1096_v32 }
 0x386   :  { %1828 = vrcp.f32 %v1115_v17  ;;  %v1127_v18 = vand.u32 2147483648, %v1115_v17  ;;  %v1125_v16 = vand.u32 2147483647, %v1115_v17  ;;  %vm1121_vm4 = vweird.f32 %v1115_v17 }
 0x387   :  { %v1109_v12 = vor.u32 1.1754944e-38, %v1108_v15  ;;  %vm1107_vm7 = vcmp.eq.f32.partialorder %v1106_v24, 8.507059e+37 }
 0x388   :  { %vm1126_vm8 = vcmp.eq.f32.partialorder %v1125_v16, 8.507059e+37 }
 0x389   :  { %v1825_v21 = vpop.eup %1824 }
 0x38a   :  { %v1135_v23 = vadd.f32 1.0, %v1825_v21 }
 0x38b   :  { %v1827_v25 = vpop.eup %1826 }
 0x38c   :  { %v1829_v13 = vpop.eup %1828  ;;  %v1098_v28 = vmul.f32 %v1827_v25, %v1096_v32  ;;  %1830 = vrcp.f32 %v1135_v23  ;;  %vm1103_vm1 = vweird.f32 %v1827_v25  ;;  %v1147_v15 = vand.u32 2147483648, %v1135_v23 }
 0x38d   :  { %v1117_v27 = vmul.f32 %v1829_v13, %v1115_v17  ;;  %1832 = vtanh.f32 %v1091_v22  ;;  %vm1122_vm2 = vweird.f32 %v1829_v13  ;;  %vm1104_vm5 = vmor %vm1102_vm3, %vm1103_vm1  ;;  %vm1141_vm10 = vweird.f32 %v1135_v23 }
 0x38e   :  { %v1099_v26 = vsub.f32 1.0, %v1098_v28  ;;  %vm1123_vm6 = vmor %vm1121_vm4, %vm1122_vm2  ;;  %v1128_v28 = vor.u32 1.1754944e-38, %v1127_v18  ;;  %v1148_v24 = vor.u32 1.1754944e-38, %v1147_v15 }
 0x38f   :  { %v1118_v10 = vsub.f32 1.0, %v1117_v27 }
 0x390   :  { %v1100_v33 = vmul.f32 %v1827_v25, %v1099_v26 }
 0x391   :  { %v1119_v9 = vmul.f32 %v1829_v13, %v1118_v10 }
 0x392   :  { %v1831_v11 = vpop.eup %1830  ;;  %v1101_v21 = vadd.f32 %v1827_v25, %v1100_v33 }
 0x393   :  { %v1120_v31 = vadd.f32 %v1829_v13, %v1119_v9  ;;  %v1137_v5 = vmul.f32 %v1831_v11, %v1135_v23  ;;  %v1833_v22 = vpop.eup %1832  ;;  %vm1142_vm9 = vweird.f32 %v1831_v11 }
 0x394   :  { %v1105_v27 = vsel %vm1104_vm5, %v1827_v25, %v1101_v21  ;;  %v1145_v25 = vand.u32 2147483647, %v1135_v23  ;;  %vm1143_vm11 = vmor %vm1141_vm10, %vm1142_vm9  ;;  %v3420_v21 = vld [vmem:[#allocation61_spill] sm:$0xff] }
 0x395   :  { %v1110_v4 = vsel %vm1107_vm7, %v1109_v12, %v1105_v27  ;;  %v1124_v26 = vsel %vm1123_vm6, %v1829_v13, %v1120_v31  ;;  %v1138_v6 = vsub.f32 1.0, %v1137_v5 }
 0x396   :  { %v1129_v10 = vsel %vm1126_vm8, %v1128_v28, %v1124_v26  ;;  %v1152_v19 = vmul.f32 %v1833_v22, %v1110_v4  ;;  %vm1146_vm12 = vcmp.eq.f32.partialorder %v1145_v25, 8.507059e+37 }
 0x397   :  { %v1151_v14 = vmul.f32 %v1129_v10, %v2958_v35  ;;  %v1139_v33 = vmul.f32 %v1831_v11, %v1138_v6 }
 0x399   :  { %v3030_v32 = vadd.f32 %v1152_v19, %v1151_v14  ;;  %v1140_v17 = vadd.f32 %v1831_v11, %v1139_v33 }
 0x39b   :  { %1834 = vtanh.f32 %v3030_v32  ;;  %v1144_v18 = vsel %vm1143_vm11, %v1831_v11, %v1140_v17 }
 0x39c   :  { %v1149_v5 = vsel %vm1146_vm12, %v1148_v24, %v1144_v18 }
 0x3a1   :  { %v1835_v16 = vpop.eup %1834 }
 0x3a2   :  { %v1155_v13 = vmul.f32 %v1835_v16, %v1149_v5 }
 0x3a4   :  { %1157 = vst [vmem:[#allocation10 + $0x20] sm:$0xff] %v1155_v13  ;;  %1181 = vmatmul.f32.vlgmr.msra.gmra.mxu0 %v1155_v13  ;;  %1201 = vmatmul.f32.vlgmr.msra.gmra.mxu1 %v1155_v13 }
 0x3a5   :  { %1221 = vmatmul.f32.vlgmr.msra.gmra.mxu2 %v1155_v13  ;;  %1241 = vmatmul.f32.vlgmr.msra.gmra.mxu3 %v1155_v13 }
 0x3a6   :  { %1477 = vmatpush.msra.mxu0 %v2689_v1  ;;  %1497 = vmatpush.msra.mxu1 %v2692_v29  ;;  %v3391_v1 = vld [vmem:[#allocation18_spill] sm:$0xff]  ;;  %v3392_v29 = vld [vmem:[#allocation19_spill] sm:$0xff] }
 0x3a7   :  { %1517 = vmatpush.msra.mxu2 %v2695_v30  ;;  %1537 = vmatpush.msra.mxu3 %v2698_v36  ;;  %v3393_v30 = vld [vmem:[#allocation20_spill] sm:$0xff]  ;;  %v3394_v36 = vld [vmem:[#allocation22_spill] sm:$0xff] }
 0x3a8   :  { %1478 = vmatpush.msra.mxu0 %v2701_v37  ;;  %1498 = vmatpush.msra.mxu1 %v2704_v38  ;;  %v3395_v37 = vld [vmem:[#allocation21_spill] sm:$0xff]  ;;  %v3396_v38 = vld [vmem:[#allocation23_spill] sm:$0xff] }
 0x3a9   :  { %1518 = vmatpush.msra.mxu2 %v2707_v39  ;;  %1538 = vmatpush.msra.mxu3 %v2710_v40  ;;  %v3397_v39 = vld [vmem:[#allocation24_spill] sm:$0xff]  ;;  %v3398_v40 = vld [vmem:[#allocation26_spill] sm:$0xff] }
 0x3aa   :  { %1479 = vmatpush.msra.mxu0 %v2713_v41  ;;  %1499 = vmatpush.msra.mxu1 %v2716_v42  ;;  %v3399_v41 = vld [vmem:[#allocation25_spill] sm:$0xff]  ;;  %v3400_v42 = vld [vmem:[#allocation27_spill] sm:$0xff] }
 0x3ab   :  { %1519 = vmatpush.msra.mxu2 %v2719_v43  ;;  %1539 = vmatpush.msra.mxu3 %v2722_v44  ;;  %v3401_v43 = vld [vmem:[#allocation28_spill] sm:$0xff]  ;;  %v3402_v44 = vld [vmem:[#allocation30_spill] sm:$0xff] }
 0x3ac   :  { %1480 = vmatpush.msra.mxu0 %v2725_v45  ;;  %1500 = vmatpush.msra.mxu1 %v2728_v46  ;;  %v3403_v45 = vld [vmem:[#allocation29_spill] sm:$0xff]  ;;  %v3404_v46 = vld [vmem:[#allocation31_spill] sm:$0xff] }
 0x3ad   :  { %1520 = vmatpush.msra.mxu2 %v2731_v48  ;;  %1540 = vmatpush.msra.mxu3 %v2734_v49  ;;  %v3405_v48 = vld [vmem:[#allocation32_spill] sm:$0xff]  ;;  %v3406_v49 = vld [vmem:[#allocation34_spill] sm:$0xff] }
 0x3ae   :  { %1481 = vmatpush.msra.mxu0 %v2737_v50  ;;  %1501 = vmatpush.msra.mxu1 %v2740_v51  ;;  %v3407_v50 = vld [vmem:[#allocation33_spill] sm:$0xff]  ;;  %v3408_v51 = vld [vmem:[#allocation35_spill] sm:$0xff] }
 0x3af   :  { %1521 = vmatpush.msra.mxu2 %v2743_v55  ;;  %1541 = vmatpush.msra.mxu3 %v2746_v8  ;;  %v3409_v55 = vld [vmem:[#allocation36_spill] sm:$0xff]  ;;  %v3410_v8 = vld [vmem:[#allocation37_spill] sm:$0xff] }
 0x3b0   :  { %1482 = vmatpush.msra.mxu0 %v2749_v54  ;;  %1502 = vmatpush.msra.mxu1 %v2752_v20  ;;  %v3411_v54 = vld [vmem:[#allocation38_spill] sm:$0xff]  ;;  %v3412_v20 = vld [vmem:[#allocation39_spill] sm:$0xff] }
 0x3b1   :  { %1522 = vmatpush.msra.mxu2 %v2755_v47  ;;  %1542 = vmatpush.msra.mxu3 %v2758_v58  ;;  %v3413_v47 = vld [vmem:[#allocation40_spill] sm:$0xff]  ;;  %v3414_v58 = vld [vmem:[#allocation41_spill] sm:$0xff] }
 0x3b2   :  { %1483 = vmatpush.msra.mxu0 %v2761_v7  ;;  %1503 = vmatpush.msra.mxu1 %v2764_v57  ;;  %v3415_v7 = vld [vmem:[#allocation42_spill] sm:$0xff]  ;;  %v3416_v57 = vld [vmem:[#allocation43_spill] sm:$0xff] }
 0x3b3   :  { %1523 = vmatpush.msra.mxu2 %v2767_v53  ;;  %1543 = vmatpush.msra.mxu3 %v2770_v52 }
 0x3b4   :  { %1484 = vmatpush.msra.mxu0 %v2773_v60  ;;  %1504 = vmatpush.msra.mxu1 %v2776_v59  ;;  %v3417_v60 = vld [vmem:[#allocation59_spill] sm:$0xff] }
 0x3b5   :  { %1524 = vmatpush.msra.mxu2 %v2779_v0  ;;  %1544 = vmatpush.msra.mxu3 %v2782_v34  ;;  %v3418_v0 = vld [vmem:[#allocation60_spill] sm:$0xff] }
 0x3b6   :  { %1485 = vmatpush.msra.mxu0 %v2785_v61  ;;  %1505 = vmatpush.msra.mxu1 %v2788_v56 }
 0x3b7   :  { %1525 = vmatpush.msra.mxu2 %v2791_v63  ;;  %1545 = vmatpush.msra.mxu3 %v2794_v3  ;;  %v3419_v3 = vld [vmem:[#allocation62_spill] sm:$0xff] }
 0x3b8   :  { %1486 = vmatpush.msra.mxu0 %v2797_v62  ;;  %1506 = vmatpush.msra.mxu1 %v2800_v2 }
 0x3b9   :  { %1526 = vmatpush.msra.mxu2 %v3391_v1  ;;  %1546 = vmatpush.msra.mxu3 %v3392_v29 }
 0x3ba   :  { %1487 = vmatpush.msra.mxu0 %v3393_v30  ;;  %1507 = vmatpush.msra.mxu1 %v3394_v36 }
 0x3bb   :  { %1527 = vmatpush.msra.mxu2 %v3395_v37  ;;  %1547 = vmatpush.msra.mxu3 %v3396_v38 }
 0x3bc   :  { %1488 = vmatpush.msra.mxu0 %v3397_v39  ;;  %1508 = vmatpush.msra.mxu1 %v3398_v40 }
 0x3bd   :  { %1528 = vmatpush.msra.mxu2 %v3399_v41  ;;  %1548 = vmatpush.msra.mxu3 %v3400_v42 }
 0x3be   :  { %1489 = vmatpush.msra.mxu0 %v3401_v43  ;;  %1509 = vmatpush.msra.mxu1 %v3402_v44 }
 0x3bf   :  { %1529 = vmatpush.msra.mxu2 %v3403_v45  ;;  %1549 = vmatpush.msra.mxu3 %v3404_v46 }
 0x3c0   :  { %1490 = vmatpush.msra.mxu0 %v3405_v48  ;;  %1510 = vmatpush.msra.mxu1 %v3406_v49 }
 0x3c1   :  { %1530 = vmatpush.msra.mxu2 %v3407_v50  ;;  %1550 = vmatpush.msra.mxu3 %v3408_v51 }
 0x3c2   :  { %1491 = vmatpush.msra.mxu0 %v3409_v55  ;;  %1511 = vmatpush.msra.mxu1 %v3410_v8 }
 0x3c3   :  { %1531 = vmatpush.msra.mxu2 %v3411_v54  ;;  %1551 = vmatpush.msra.mxu3 %v3412_v20  ;;  %v3421_v20 = vld [vmem:[#allocation63_spill] sm:$0xff] }
 0x3c4   :  { %1492 = vmatpush.msra.mxu0 %v3413_v47  ;;  %1512 = vmatpush.msra.mxu1 %v3414_v58  ;;  %v3422_v58 = vld [vmem:[#allocation64_spill] sm:$0xff] }
 0x3c5   :  { %1532 = vmatpush.msra.mxu2 %v3415_v7  ;;  %1552 = vmatpush.msra.mxu3 %v3416_v57 }
 0x421   :  { %v1182_v53 = vpop.f32.mrf.mxu0  ;;  %v1202_v52 = vpop.f32.mrf.mxu1 }
 0x422   :  { %v1245_v59 = vadd.f32 %v1182_v53, %v3417_v60  ;;  %v1246_v34 = vadd.f32 %v1202_v52, %v3418_v0  ;;  %v3423_v60 = vld [vmem:[#allocation66_spill] sm:$0xff] }
 0x424   :  { %v1738_v61 = vmul.f32 -1.442695, %v1245_v59  ;;  %v1739_v56 = vmul.f32 -1.442695, %v1246_v34 }
 0x426   :  { %1836 = vpow2.f32 %v1738_v61 }
 0x427   :  { %1838 = vpow2.f32 %v1739_v56 }
 0x428   :  { %v1242_v63 = vpop.f32.mrf.mxu3  ;;  %v1222_v4 = vpop.f32.mrf.mxu2 }
 0x429   :  { %v1248_v62 = vadd.f32 %v1242_v63, %v3419_v3  ;;  %v1247_v12 = vadd.f32 %v1222_v4, %v3420_v21 }
 0x42b   :  { %v1740_v2 = vmul.f32 -1.442695, %v1248_v62 }
 0x42c   :  { %v1837_v35 = vpop.eup %1836 }
 0x42d   :  { %v1839_v14 = vpop.eup %1838  ;;  %v1252_v19 = vadd.f32 1.0, %v1837_v35  ;;  %1840 = vpow2.f32 %v1740_v2 }
 0x42e   :  { %v1271_v6 = vadd.f32 1.0, %v1839_v14  ;;  %v3424_v14 = vld [vmem:[#allocation65_spill] sm:$0xff] }
 0x42f   :  { %1842 = vrcp.f32 %v1252_v19  ;;  %v1264_v10 = vand.u32 2147483648, %v1252_v19  ;;  %v1262_v15 = vand.u32 2147483647, %v1252_v19  ;;  %vm1258_vm15 = vweird.f32 %v1252_v19 }
 0x430   :  { %1844 = vrcp.f32 %v1271_v6  ;;  %v1283_v33 = vand.u32 2147483648, %v1271_v6  ;;  %v1281_v18 = vand.u32 2147483647, %v1271_v6  ;;  %vm1277_vm0 = vweird.f32 %v1271_v6 }
 0x431   :  { %v1265_v5 = vor.u32 1.1754944e-38, %v1264_v10  ;;  %vm1263_vm3 = vcmp.eq.f32.partialorder %v1262_v15, 8.507059e+37 }
 0x432   :  { %v1284_v29 = vor.u32 1.1754944e-38, %v1283_v33  ;;  %vm1282_vm4 = vcmp.eq.f32.partialorder %v1281_v18, 8.507059e+37 }
 0x433   :  { %v1841_v11 = vpop.eup %1840 }
 0x434   :  { %v1291_v23 = vadd.f32 1.0, %v1841_v11 }
 0x435   :  { %v1843_v9 = vpop.eup %1842 }
 0x436   :  { %v1845_v31 = vpop.eup %1844  ;;  %v1254_v28 = vmul.f32 %v1843_v9, %v1252_v19  ;;  %1846 = vrcp.f32 %v1291_v23  ;;  %vm1259_vm13 = vweird.f32 %v1843_v9  ;;  %v1303_v46 = vand.u32 2147483648, %v1291_v23 }
 0x437   :  { %v1273_v27 = vmul.f32 %v1845_v31, %v1271_v6  ;;  %1848 = vtanh.f32 %v1247_v12  ;;  %vm1278_vm14 = vweird.f32 %v1845_v31  ;;  %vm1260_vm1 = vmor %vm1258_vm15, %vm1259_vm13  ;;  %vm1297_vm6 = vweird.f32 %v1291_v23 }
 0x438   :  { %v1255_v22 = vsub.f32 1.0, %v1254_v28  ;;  %vm1279_vm2 = vmor %vm1277_vm0, %vm1278_vm14  ;;  %v1301_v48 = vand.u32 2147483647, %v1291_v23  ;;  %v1304_v50 = vor.u32 1.1754944e-38, %v1303_v46 }
 0x439   :  { %v1274_v26 = vsub.f32 1.0, %v1273_v27 }
 0x43a   :  { %v1256_v17 = vmul.f32 %v1843_v9, %v1255_v22  ;;  %vm1302_vm8 = vcmp.eq.f32.partialorder %v1301_v48, 8.507059e+37 }
 0x43b   :  { %v1275_v25 = vmul.f32 %v1845_v31, %v1274_v26 }
 0x43c   :  { %v1847_v24 = vpop.eup %1846  ;;  %v1257_v16 = vadd.f32 %v1843_v9, %v1256_v17 }
 0x43d   :  { %v1276_v13 = vadd.f32 %v1845_v31, %v1275_v25  ;;  %v1293_v1 = vmul.f32 %v1847_v24, %v1291_v23  ;;  %v1849_v36 = vpop.eup %1848  ;;  %vm1298_vm5 = vweird.f32 %v1847_v24 }
 0x43e   :  { %v1261_v30 = vsel %vm1260_vm1, %v1843_v9, %v1257_v16  ;;  %vm1299_vm7 = vmor %vm1297_vm6, %vm1298_vm5 }
 0x43f   :  { %v1266_v37 = vsel %vm1263_vm3, %v1265_v5, %v1261_v30  ;;  %v1280_v38 = vsel %vm1279_vm2, %v1845_v31, %v1276_v13  ;;  %v1294_v39 = vsub.f32 1.0, %v1293_v1 }
 0x440   :  { %v1285_v40 = vsel %vm1282_vm4, %v1284_v29, %v1280_v38  ;;  %v1308_v41 = vmul.f32 %v1849_v36, %v1266_v37 }
 0x441   :  { %v1307_v42 = vmul.f32 %v1285_v40, %v3030_v32  ;;  %v1295_v43 = vmul.f32 %v1847_v24, %v1294_v39 }
 0x443   :  { %v3102_v44 = vadd.f32 %v1308_v41, %v1307_v42  ;;  %v1296_v45 = vadd.f32 %v1847_v24, %v1295_v43 }
 0x445   :  { %1850 = vtanh.f32 %v3102_v44  ;;  %v1300_v49 = vsel %vm1299_vm7, %v1847_v24, %v1296_v45 }
 0x446   :  { %v1305_v55 = vsel %vm1302_vm8, %v1304_v50, %v1300_v49  ;;  %v3425_v49 = vld [vmem:[#allocation67_spill] sm:$0xff] }
 0x44b   :  { %v1851_v51 = vpop.eup %1850 }
 0x44c   :  { %v1311_v8 = vmul.f32 %v1851_v51, %v1305_v55  ;;  %v3426_v51 = vld [vmem:[#allocation68_spill] sm:$0xff] }
 0x44e   :  { %1313 = vst [vmem:[#allocation10 + $0x28] sm:$0xff] %v1311_v8  ;;  %1337 = vmatmul.f32.vlgmr.msrb.gmra.mxu0 %v1311_v8  ;;  %1357 = vmatmul.f32.vlgmr.msrb.gmra.mxu1 %v1311_v8 }
 0x44f   :  { %1377 = vmatmul.f32.vlgmr.msrb.gmra.mxu2 %v1311_v8  ;;  %1397 = vmatmul.f32.vlgmr.msrb.gmra.mxu3 %v1311_v8 }
 0x4cb   :  { %v1338_v32 = vpop.f32.mrf.mxu0  ;;  %v1358_v54 = vpop.f32.mrf.mxu1 }
 0x4cc   :  { %v1401_v47 = vadd.f32 %v1338_v32, %v3421_v20  ;;  %v1402_v7 = vadd.f32 %v1358_v54, %v3422_v58  ;;  %v3427_v20 = vld [vmem:[#allocation70_spill] sm:$0xff] }
 0x4ce   :  { %v1741_v57 = vmul.f32 -1.442695, %v1401_v47  ;;  %v1742_v53 = vmul.f32 -1.442695, %v1402_v7 }
 0x4d0   :  { %1852 = vpow2.f32 %v1741_v57 }
 0x4d1   :  { %1854 = vpow2.f32 %v1742_v53 }
 0x4d2   :  { %v1398_v52 = vpop.f32.mrf.mxu3  ;;  %v1378_v3 = vpop.f32.mrf.mxu2 }
 0x4d3   :  { %v1404_v59 = vadd.f32 %v1398_v52, %v3423_v60  ;;  %v1403_v19 = vadd.f32 %v1378_v3, %v3424_v14 }
 0x4d5   :  { %v1743_v0 = vmul.f32 -1.442695, %v1404_v59 }
 0x4d6   :  { %v1853_v34 = vpop.eup %1852 }
 0x4d7   :  { %v1855_v61 = vpop.eup %1854  ;;  %v1408_v56 = vadd.f32 1.0, %v1853_v34  ;;  %1856 = vpow2.f32 %v1743_v0 }
 0x4d8   :  { %v1427_v63 = vadd.f32 1.0, %v1855_v61  ;;  %v3428_v61 = vld [vmem:[#allocation69_spill] sm:$0xff] }
 0x4d9   :  { %1858 = vrcp.f32 %v1408_v56  ;;  %v1420_v21 = vand.u32 2147483648, %v1408_v56  ;;  %v1418_v28 = vand.u32 2147483647, %v1408_v56  ;;  %vm1414_vm11 = vweird.f32 %v1408_v56 }
 0x4da   :  { %1860 = vrcp.f32 %v1427_v63  ;;  %v1439_v12 = vand.u32 2147483648, %v1427_v63  ;;  %v1437_v22 = vand.u32 2147483647, %v1427_v63  ;;  %vm1433_vm12 = vweird.f32 %v1427_v63 }
 0x4db   :  { %v1421_v33 = vor.u32 1.1754944e-38, %v1420_v21  ;;  %vm1419_vm15 = vcmp.eq.f32.partialorder %v1418_v28, 8.507059e+37 }
 0x4dc   :  { %v1440_v25 = vor.u32 1.1754944e-38, %v1439_v12  ;;  %vm1438_vm0 = vcmp.eq.f32.partialorder %v1437_v22, 8.507059e+37 }
 0x4dd   :  { %v1857_v62 = vpop.eup %1856 }
 0x4de   :  { %v1447_v2 = vadd.f32 1.0, %v1857_v62 }
 0x4df   :  { %v1859_v35 = vpop.eup %1858 }
 0x4e0   :  { %v1861_v6 = vpop.eup %1860  ;;  %v1410_v4 = vmul.f32 %v1859_v35, %v1408_v56  ;;  %1862 = vrcp.f32 %v1447_v2  ;;  %vm1415_vm9 = vweird.f32 %v1859_v35  ;;  %v1459_v39 = vand.u32 2147483648, %v1447_v2 }
 0x4e1   :  { %v1429_v11 = vmul.f32 %v1861_v6, %v1427_v63  ;;  %1864 = vtanh.f32 %v1403_v19  ;;  %vm1434_vm10 = vweird.f32 %v1861_v6  ;;  %vm1416_vm13 = vmor %vm1414_vm11, %vm1415_vm9  ;;  %vm1453_vm2 = vweird.f32 %v1447_v2 }
 0x4e2   :  { %v1411_v23 = vsub.f32 1.0, %v1410_v4  ;;  %vm1435_vm14 = vmor %vm1433_vm12, %vm1434_vm10  ;;  %v1457_v40 = vand.u32 2147483647, %v1447_v2  ;;  %v1460_v42 = vor.u32 1.1754944e-38, %v1459_v39 }
 0x4e3   :  { %v1430_v9 = vsub.f32 1.0, %v1429_v11 }
 0x4e4   :  { %v1412_v31 = vmul.f32 %v1859_v35, %v1411_v23  ;;  %vm1458_vm4 = vcmp.eq.f32.partialorder %v1457_v40, 8.507059e+37 }
 0x4e5   :  { %v1431_v27 = vmul.f32 %v1861_v6, %v1430_v9 }
 0x4e6   :  { %v1863_v26 = vpop.eup %1862  ;;  %v1413_v10 = vadd.f32 %v1859_v35, %v1412_v31 }
 0x4e7   :  { %v1432_v17 = vadd.f32 %v1861_v6, %v1431_v27  ;;  %v1449_v15 = vmul.f32 %v1863_v26, %v1447_v2  ;;  %v1865_v24 = vpop.eup %1864  ;;  %vm1454_vm1 = vweird.f32 %v1863_v26 }
 0x4e8   :  { %v1417_v18 = vsel %vm1416_vm13, %v1859_v35, %v1413_v10  ;;  %vm1455_vm3 = vmor %vm1453_vm2, %vm1454_vm1 }
 0x4e9   :  { %v1422_v16 = vsel %vm1419_vm15, %v1421_v33, %v1417_v18  ;;  %v1436_v5 = vsel %vm1435_vm14, %v1861_v6, %v1432_v17  ;;  %v1450_v13 = vsub.f32 1.0, %v1449_v15 }
 0x4ea   :  { %v1441_v1 = vsel %vm1438_vm0, %v1440_v25, %v1436_v5  ;;  %v1464_v29 = vmul.f32 %v1865_v24, %v1422_v16 }
 0x4eb   :  { %v1463_v30 = vmul.f32 %v1441_v1, %v3102_v44  ;;  %v1451_v36 = vmul.f32 %v1863_v26, %v1450_v13 }
 0x4ed   :  { %v3110_v37 = vadd.f32 %v1464_v29, %v1463_v30  ;;  %v1452_v38 = vadd.f32 %v1863_v26, %v1451_v36 }
 0x4ef   :  { %1866 = vtanh.f32 %v3110_v37  ;;  %v1456_v41 = vsel %vm1455_vm3, %v1863_v26, %v1452_v38 }
 0x4f0   :  { %v1461_v45 = vsel %vm1458_vm4, %v1460_v42, %v1456_v41 }
 0x4f5   :  { %v1867_v43 = vpop.eup %1866 }
 0x4f6   :  { %v1467_v46 = vmul.f32 %v1867_v43, %v1461_v45 }
 0x4f8   :  { %1469 = vst [vmem:[#allocation10 + $0x30] sm:$0xff] %v1467_v46  ;;  %1493 = vmatmul.f32.vlgmr.msra.gmra.mxu0 %v1467_v46  ;;  %1513 = vmatmul.f32.vlgmr.msra.gmra.mxu1 %v1467_v46 }
 0x4f9   :  { %1533 = vmatmul.f32.vlgmr.msra.gmra.mxu2 %v1467_v46  ;;  %1553 = vmatmul.f32.vlgmr.msra.gmra.mxu3 %v1467_v46 }
 0x575   :  { %v1494_v44 = vpop.f32.mrf.mxu0  ;;  %v1514_v48 = vpop.f32.mrf.mxu1 }
 0x576   :  { %v1557_v50 = vadd.f32 %v1494_v44, %v3425_v49  ;;  %v1558_v55 = vadd.f32 %v1514_v48, %v3426_v51 }
 0x578   :  { %v1744_v8 = vmul.f32 -1.442695, %v1557_v50  ;;  %v1745_v32 = vmul.f32 -1.442695, %v1558_v55 }
 0x57a   :  { %1868 = vpow2.f32 %v1744_v8 }
 0x57b   :  { %1870 = vpow2.f32 %v1745_v32 }
 0x57c   :  { %v1554_v54 = vpop.f32.mrf.mxu3  ;;  %v1534_v60 = vpop.f32.mrf.mxu2 }
 0x57d   :  { %v1560_v47 = vadd.f32 %v1554_v54, %v3427_v20  ;;  %v1559_v56 = vadd.f32 %v1534_v60, %v3428_v61 }
 0x57f   :  { %v1746_v58 = vmul.f32 -1.442695, %v1560_v47 }
 0x580   :  { %v1869_v7 = vpop.eup %1868 }
 0x581   :  { %v1871_v57 = vpop.eup %1870  ;;  %v1564_v53 = vadd.f32 1.0, %v1869_v7  ;;  %1872 = vpow2.f32 %v1746_v58 }
 0x582   :  { %v1583_v52 = vadd.f32 1.0, %v1871_v57 }
 0x583   :  { %1874 = vrcp.f32 %v1564_v53  ;;  %v1576_v14 = vand.u32 2147483648, %v1564_v53  ;;  %v1574_v4 = vand.u32 2147483647, %v1564_v53  ;;  %vm1570_vm7 = vweird.f32 %v1564_v53 }
 0x584   :  { %1876 = vrcp.f32 %v1583_v52  ;;  %v1595_v19 = vand.u32 2147483648, %v1583_v52  ;;  %v1593_v23 = vand.u32 2147483647, %v1583_v52  ;;  %vm1589_vm8 = vweird.f32 %v1583_v52 }
 0x585   :  { %v1577_v12 = vor.u32 1.1754944e-38, %v1576_v14  ;;  %vm1575_vm11 = vcmp.eq.f32.partialorder %v1574_v4, 8.507059e+37 }
 0x586   :  { %v1596_v27 = vor.u32 1.1754944e-38, %v1595_v19  ;;  %vm1594_vm12 = vcmp.eq.f32.partialorder %v1593_v23, 8.507059e+37 }
 0x587   :  { %v1873_v59 = vpop.eup %1872 }
 0x588   :  { %v1603_v0 = vadd.f32 1.0, %v1873_v59 }
 0x589   :  { %v1875_v34 = vpop.eup %1874 }
 0x58a   :  { %v1877_v63 = vpop.eup %1876  ;;  %v1566_v3 = vmul.f32 %v1875_v34, %v1564_v53  ;;  %1878 = vrcp.f32 %v1603_v0  ;;  %vm1571_vm5 = vweird.f32 %v1875_v34  ;;  %v1615_v13 = vand.u32 2147483648, %v1603_v0 }
 0x58b   :  { %v1585_v62 = vmul.f32 %v1877_v63, %v1583_v52  ;;  %1880 = vtanh.f32 %v1559_v56  ;;  %vm1590_vm6 = vweird.f32 %v1877_v63  ;;  %vm1572_vm9 = vmor %vm1570_vm7, %vm1571_vm5  ;;  %vm1609_vm14 = vweird.f32 %v1603_v0 }
 0x58c   :  { %v1567_v2 = vsub.f32 1.0, %v1566_v3  ;;  %vm1591_vm10 = vmor %vm1589_vm8, %vm1590_vm6  ;;  %v1613_v1 = vand.u32 2147483647, %v1603_v0  ;;  %v1616_v30 = vor.u32 1.1754944e-38, %v1615_v13 }
 0x58d   :  { %v1586_v35 = vsub.f32 1.0, %v1585_v62 }
 0x58e   :  { %v1568_v6 = vmul.f32 %v1875_v34, %v1567_v2  ;;  %vm1614_vm0 = vcmp.eq.f32.partialorder %v1613_v1, 8.507059e+37 }
 0x58f   :  { %v1587_v11 = vmul.f32 %v1877_v63, %v1586_v35 }
 0x590   :  { %v1879_v9 = vpop.eup %1878  ;;  %v1569_v21 = vadd.f32 %v1875_v34, %v1568_v6 }
 0x591   :  { %v1588_v31 = vadd.f32 %v1877_v63, %v1587_v11  ;;  %v1605_v28 = vmul.f32 %v1879_v9, %v1603_v0  ;;  %v1881_v26 = vpop.eup %1880  ;;  %vm1610_vm13 = vweird.f32 %v1879_v9 }
 0x592   :  { %v1573_v22 = vsel %vm1572_vm9, %v1875_v34, %v1569_v21  ;;  %vm1611_vm15 = vmor %vm1609_vm14, %vm1610_vm13 }
 0x593   :  { %v1578_v10 = vsel %vm1575_vm11, %v1577_v12, %v1573_v22  ;;  %v1592_v33 = vsel %vm1591_vm10, %v1877_v63, %v1588_v31  ;;  %v1606_v17 = vsub.f32 1.0, %v1605_v28 }
 0x594   :  { %v1597_v15 = vsel %vm1594_vm12, %v1596_v27, %v1592_v33  ;;  %v1620_v25 = vmul.f32 %v1881_v26, %v1578_v10 }
 0x595   :  { %v1619_v18 = vmul.f32 %v1597_v15, %v3110_v37  ;;  %v1607_v24 = vmul.f32 %v1879_v9, %v1606_v17 }
 0x597   :  { %v1621_v16 = vadd.f32 %v1620_v25, %v1619_v18  ;;  %v1608_v5 = vadd.f32 %v1879_v9, %v1607_v24 }
 0x599   :  { %1882 = vtanh.f32 %v1621_v16  ;;  %1632 = vst [vmem:[#allocation13] sm:$0xff] %v1621_v16  ;;  %v1612_v29 = vsel %vm1611_vm15, %v1879_v9, %v1608_v5 }
 0x59a   :  { %v1617_v37 = vsel %vm1614_vm0, %v1616_v30, %v1612_v29 }
 0x59f   :  { %v1883_v36 = vpop.eup %1882 }
 0x5a0   :  { %v1623_v38 = vmul.f32 %v1883_v36, %v1617_v37 }
 0x5a2   :  { %1625 = vst [vmem:[#allocation10 + $0x38] sm:$0xff] %v1623_v38 }
 0x5a3   :  { %1631 = vst [vmem:[#allocation11] sm:$0xff] %v1623_v38  ;;  %1645 = dma.vmem_to_hbm [thread:$0]  %s1638_s24, 1024, %s1640_s27, [#allocation7], %s2083_s6, %s2083_s6, %s2084_s7  }
 0x5a4   :  { %1656 = dma.vmem_to_hbm [thread:$0]  %s1652_s29, 128, %s1654_s10, [#allocation12]  }
 0x5a5   :  { %1667 = dma.vmem_to_hbm [thread:$0]  %s1663_s11, 128, %s1665_s14, [#allocation12]  }
 0x5a6   :  { %2072 = dma.done.wait [#allocation7], 1024  }
 0x5a7   :  { %2073 = vsyncadd [#allocation7], 4294966272 }
 0x5a8   :  { %2074 = dma.done.wait [#allocation12], 256  }
 0x5a9   :  { %2075 = vsyncadd [#allocation12], 4294967040 }
 0x5aa   :  { %1680 = vsyncpa [#allocation6], 1 }
 0x5ab   :  { %1681 = vsyncpa [#allocation9], 1 }
 0x5ac   :  { %1682 = vsyncpa [#allocation7], 1 }
 0x5ad   :  { %1683 = vsyncpa [#allocation12], 1 }

</bundles_post_ra>
